<compile_context>
chip_gen: v7x
topology: tpu7x:2x2x1
jax: 0.10.0
libtpu: 0.0.40
codegen_flags: <defaults>
</compile_context>

<pallas_src>
import functools

import jax
import jax.numpy as jnp
from jax.experimental import pallas as pl
from jax.experimental.pallas import tpu as pltpu


# ---------------------------------------------------------------------------
# Pallas kernel
# ---------------------------------------------------------------------------
def _layernorm(x, gamma, beta, eps=1e-5):
    mu = jnp.mean(x, axis=-1, keepdims=True)
    xc = x - mu
    var = jnp.mean(xc * xc, axis=-1, keepdims=True)
    return xc * jax.lax.rsqrt(var + eps) * gamma + beta


def fused_ctransformer_kernel(x_ref,
                              wq_ref, wk_ref, wv_ref, wu_ref, bu_ref,
                              g1_ref, b1_ref,
                              w1_ref, bb1_ref, w2_ref, bb2_ref,
                              g2_ref, b2_ref,
                              wc_ref, bc_ref,
                              o_ref,
                              acc_ref,
                              *, batch, seq, heads, max_pool):
    """One grid step = one transformer layer; last step also runs the head."""
    d = pl.program_id(0)
    B, T, H = batch, seq, heads

    # Load the embedded input into the resident activation scratch once.
    @pl.when(d == 0)
    def _():
        acc_ref[...] = x_ref[...]

    x = acc_ref[...]                                  # (M, K) f32, M = B*T
    M, K = x.shape
    inv_sqrt_k = float(K) ** -0.5                     # == (k**-0.25) on q and k
    xb = x.astype(jnp.bfloat16)

    # ---------------- self-attention (heads via per-head weight planes) -----
    attn = jnp.zeros((M, K), jnp.float32)
    for h in range(H):                                # static unroll, H small
        qh = jnp.dot(xb, wq_ref[0, h], preferred_element_type=jnp.float32)
        kh = jnp.dot(xb, wk_ref[0, h], preferred_element_type=jnp.float32)
        vh = jnp.dot(xb, wv_ref[0, h], preferred_element_type=jnp.float32)

        q3 = qh.reshape(B, T, K).astype(jnp.bfloat16)
        k3 = kh.reshape(B, T, K).astype(jnp.bfloat16)
        v3 = vh.reshape(B, T, K).astype(jnp.bfloat16)

        # scores: contract K directly (no explicit transpose), batched over B
        s = jnp.einsum('bqd,bkd->bqk', q3, k3,
                       preferred_element_type=jnp.float32) * inv_sqrt_k
        s = s - jnp.max(s, axis=-1, keepdims=True)
        p = jnp.exp(s)
        p = p * pl.reciprocal(jnp.sum(p, axis=-1, keepdims=True), approx=True)

        oh = jnp.einsum('bqk,bkd->bqd', p.astype(jnp.bfloat16), v3,
                        preferred_element_type=jnp.float32)     # (B, T, K)

        # unify heads: sum_h (out_h @ wu_h)  ==  concat_h(out_h) @ wu
        attn = attn + jnp.dot(oh.reshape(M, K).astype(jnp.bfloat16),
                              wu_ref[0, h],
                              preferred_element_type=jnp.float32)

    attn = attn + bu_ref[0]                           # (M, K) + (1, K)

    y = _layernorm(attn + x, g1_ref[0], b1_ref[0])    # residual + LN (f32)

    # ---------------- feed-forward ------------------------------------------
    ffh = jnp.dot(y.astype(jnp.bfloat16), w1_ref[0],
                  preferred_element_type=jnp.float32) + bb1_ref[0]
    ffh = jnp.maximum(ffh, 0.0)
    ff = jnp.dot(ffh.astype(jnp.bfloat16), w2_ref[0],
                 preferred_element_type=jnp.float32) + bb2_ref[0]

    x_new = _layernorm(ff + y, g2_ref[0], b2_ref[0])
    acc_ref[...] = x_new

    # ---------------- classification head on the final layer ----------------
    @pl.when(d == pl.num_programs(0) - 1)
    def _():
        xt = x_new.reshape(B, T, K)
        if max_pool:
            pooled = jnp.max(xt, axis=1)              # (B, K)
        else:
            pooled = jnp.mean(xt, axis=1)             # (B, K)
        logits = jnp.dot(pooled, wc_ref[...],
                         preferred_element_type=jnp.float32) + bc_ref[...]
        m = jnp.max(logits, axis=-1, keepdims=True)
        lse = m + jnp.log(jnp.sum(jnp.exp(logits - m), axis=-1, keepdims=True))
        o_ref[...] = logits - lse


# ---------------------------------------------------------------------------
# Wrapper (weight stacking + pallas_call plumbing)
# ---------------------------------------------------------------------------
def ctransformer_forward(tokens, params, *, heads, max_pool=False):
    token_emb = params["token_emb"]
    pos_emb = params["pos_emb"]
    B, T = tokens.shape
    K = token_emb.shape[1]
    H = heads

    # Embedding gather + positional add are glue in plain JAX.
    tok = jnp.take(token_emb, tokens, axis=0)                 # (B, T, K)
    x = (tok + pos_emb[:T][None, :, :]).astype(jnp.float32)
    x2 = x.reshape(B * T, K)                                   # fold (B, T) -> M

    blocks = params["blocks"]
    depth = len(blocks)

    def stack(name):
        return jnp.stack([bp[name] for bp in blocks], axis=0)

    def per_head_in(w):      # (K, H*K) -> (H, K, K); head h = cols h*K:(h+1)*K
        return jnp.transpose(w.reshape(K, H, K), (1, 0, 2))

    def per_head_out(w):     # (H*K, K) -> (H, K, K); head h = rows h*K:(h+1)*K
        return w.reshape(H, K, K)

    # matmul weights in bf16 (f32 accumulate inside kernel); LN/bias params f32
    wq = jnp.stack([per_head_in(bp["wq"]) for bp in blocks]).astype(jnp.bfloat16)
    wk = jnp.stack([per_head_in(bp["wk"]) for bp in blocks]).astype(jnp.bfloat16)
    wv = jnp.stack([per_head_in(bp["wv"]) for bp in blocks]).astype(jnp.bfloat16)
    wu = jnp.stack([per_head_out(bp["wu"]) for bp in blocks]).astype(jnp.bfloat16)
    bu = stack("bu")
    g1 = stack("g1")
    b1 = stack("b1")
    w1 = stack("w1").astype(jnp.bfloat16)
    bb1 = stack("bb1")
    w2 = stack("w2").astype(jnp.bfloat16)
    bb2 = stack("bb2")
    g2 = stack("g2")
    b2 = stack("b2")
    wc = params["wc"]
    bc = params["bc"]
    C = wc.shape[1]

    def full_spec(a):
        nd = a.ndim
        return pl.BlockSpec(a.shape, lambda d, _nd=nd: (0,) * _nd)

    def perlayer_spec(a):
        nd = a.ndim
        return pl.BlockSpec((1,) + a.shape[1:],
                            lambda d, _nd=nd: (d,) + (0,) * (_nd - 1))

    in_specs = [
        full_spec(x2),
        perlayer_spec(wq), perlayer_spec(wk), perlayer_spec(wv),
        perlayer_spec(wu), perlayer_spec(bu),
        perlayer_spec(g1), perlayer_spec(b1),
        perlayer_spec(w1), perlayer_spec(bb1),
        perlayer_spec(w2), perlayer_spec(bb2),
        perlayer_spec(g2), perlayer_spec(b2),
        full_spec(wc), full_spec(bc),
    ]

    kernel = functools.partial(fused_ctransformer_kernel,
                               batch=B, seq=T, heads=H, max_pool=max_pool)

    return pl.pallas_call(
        kernel,
        out_shape=jax.ShapeDtypeStruct((B, C), jnp.float32),
        grid=(depth,),
        in_specs=in_specs,
        out_specs=pl.BlockSpec((B, C), lambda d: (0, 0)),
        scratch_shapes=[pltpu.VMEM((B * T, K), jnp.float32)],
        compiler_params=pltpu.CompilerParams(
            dimension_semantics=("arbitrary",)),
    )(x2, wq, wk, wv, wu, bu, g1, b1, w1, bb1, w2, bb2, g2, b2, wc, bc)


# ---------------------------------------------------------------------------
# Deterministic parameter init (synthetic, PyTorch-layout-equivalent, flat)
# ---------------------------------------------------------------------------
def init_params(key, *, k, heads, depth, seq_length, num_tokens, num_classes):
    keys = iter(jax.random.split(key, 8 + 8 * depth))
    nk = lambda shape, scale=0.02: (scale * jax.random.normal(
        next(keys), shape, dtype=jnp.float32))

    params = {
        "token_emb": nk((num_tokens, k), 1.0),
        "pos_emb": nk((seq_length, k), 1.0),
        "wc": nk((k, num_classes)),
        "bc": jnp.zeros((1, num_classes), jnp.float32),
        "blocks": [],
    }
    for _ in range(depth):
        params["blocks"].append({
            "wq": nk((k, k * heads)),
            "wk": nk((k, k * heads)),
            "wv": nk((k, k * heads)),
            "wu": nk((k * heads, k)),
            "bu": jnp.zeros((1, k), jnp.float32),
            "g1": jnp.ones((1, k), jnp.float32),
            "b1": jnp.zeros((1, k), jnp.float32),
            "w1": nk((k, 4 * k)),
            "bb1": jnp.zeros((1, 4 * k), jnp.float32),
            "w2": nk((4 * k, k)),
            "bb2": jnp.zeros((1, k), jnp.float32),
            "g2": jnp.ones((1, k), jnp.float32),
            "b2": jnp.zeros((1, k), jnp.float32),
        })
    return params


# ---------------------------------------------------------------------------
if __name__ == "__main__":
    K = 32          # embedding dim (= per-head dim, as in the reference)
    HEADS = 4
    DEPTH = 2
    SEQ = 8
    NUM_TOKENS = 100
    NUM_CLASSES = 4
    BATCH = 2

    root = jax.random.PRNGKey(0)
    pkey, dkey = jax.random.split(root)
    params = init_params(pkey, k=K, heads=HEADS, depth=DEPTH,
                         seq_length=SEQ, num_tokens=NUM_TOKENS,
                         num_classes=NUM_CLASSES)

    tokens = jax.random.randint(dkey, (BATCH, SEQ), 0, NUM_TOKENS, dtype=jnp.int32)

    out = ctransformer_forward(tokens, params, heads=HEADS, max_pool=False)
    out = jax.block_until_ready(out)

    assert out.shape == (BATCH, NUM_CLASSES)
    # rows of log_softmax must exponentiate-sum to 1
    assert bool(jnp.allclose(jnp.exp(out).sum(axis=1), 1.0, atol=1e-5))
    print("KERNEL_OK")
</pallas_src>

<mosaic_0001>
module attributes {stable_mosaic.version = 11 : i64} {
  func.func @fused_ctransformer_kernel(%arg0: i32, %arg1: memref<16x32xf32, #tpu.memory_space<vmem>>, %arg2: memref<1x4x32x32xbf16, #tpu.memory_space<vmem>>, %arg3: memref<1x4x32x32xbf16, #tpu.memory_space<vmem>>, %arg4: memref<1x4x32x32xbf16, #tpu.memory_space<vmem>>, %arg5: memref<1x4x32x32xbf16, #tpu.memory_space<vmem>>, %arg6: memref<1x1x32xf32, #tpu.memory_space<vmem>>, %arg7: memref<1x1x32xf32, #tpu.memory_space<vmem>>, %arg8: memref<1x1x32xf32, #tpu.memory_space<vmem>>, %arg9: memref<1x32x128xbf16, #tpu.memory_space<vmem>>, %arg10: memref<1x1x128xf32, #tpu.memory_space<vmem>>, %arg11: memref<1x128x32xbf16, #tpu.memory_space<vmem>>, %arg12: memref<1x1x32xf32, #tpu.memory_space<vmem>>, %arg13: memref<1x1x32xf32, #tpu.memory_space<vmem>>, %arg14: memref<1x1x32xf32, #tpu.memory_space<vmem>>, %arg15: memref<32x4xf32, #tpu.memory_space<vmem>>, %arg16: memref<1x4xf32, #tpu.memory_space<vmem>>, %arg17: memref<2x4xf32, #tpu.memory_space<vmem>>, %arg18: memref<16x32xf32, #tpu.memory_space<vmem>>) attributes {dimension_semantics = [#tpu.dimension_semantics<arbitrary>], iteration_bounds = array<i64: 2>, scalar_prefetch = 0 : i64, scratch_operands = 1 : i64, tpu.core_type = #tpu.core_type<tc>, window_params = [{pipeline_mode = #tpu.pipeline_mode<synchronous>, transform_indices = @transform_0, window_bounds = array<i64: 16, 32>}, {transform_indices = @transform_1, window_bounds = array<i64: 1, 4, 32, 32>}, {transform_indices = @transform_2, window_bounds = array<i64: 1, 4, 32, 32>}, {transform_indices = @transform_3, window_bounds = array<i64: 1, 4, 32, 32>}, {transform_indices = @transform_4, window_bounds = array<i64: 1, 4, 32, 32>}, {transform_indices = @transform_5, window_bounds = array<i64: 1, 1, 32>}, {transform_indices = @transform_6, window_bounds = array<i64: 1, 1, 32>}, {transform_indices = @transform_7, window_bounds = array<i64: 1, 1, 32>}, {transform_indices = @transform_8, window_bounds = array<i64: 1, 32, 128>}, {transform_indices = @transform_9, window_bounds = array<i64: 1, 1, 128>}, {transform_indices = @transform_10, window_bounds = array<i64: 1, 128, 32>}, {transform_indices = @transform_11, window_bounds = array<i64: 1, 1, 32>}, {transform_indices = @transform_12, window_bounds = array<i64: 1, 1, 32>}, {transform_indices = @transform_13, window_bounds = array<i64: 1, 1, 32>}, {pipeline_mode = #tpu.pipeline_mode<synchronous>, transform_indices = @transform_14, window_bounds = array<i64: 32, 4>}, {pipeline_mode = #tpu.pipeline_mode<synchronous>, transform_indices = @transform_15, window_bounds = array<i64: 1, 4>}, {pipeline_mode = #tpu.pipeline_mode<synchronous>, transform_indices = @transform_16, window_bounds = array<i64: 2, 4>}]} {
    %c0_i32 = arith.constant 0 : i32
    %0 = arith.cmpi eq, %arg0, %c0_i32 : i32
    %1 = arith.extui %0 : i1 to i32
    %c0_i32_0 = arith.constant 0 : i32
    %2 = arith.cmpi ne, %1, %c0_i32_0 : i32
    scf.if %2 {
      %c0_142 = arith.constant 0 : index
      %c0_143 = arith.constant 0 : index
      %226 = vector.load %arg1[%c0_142, %c0_143] : memref<16x32xf32, #tpu.memory_space<vmem>>, vector<16x32xf32>
      %c0_144 = arith.constant 0 : index
      %c0_145 = arith.constant 0 : index
      %227 = vector.load %arg18[%c0_144, %c0_145] : memref<16x32xf32, #tpu.memory_space<vmem>>, vector<16x32xf32>
      tpu.vector_store %arg18[%c0_144, %c0_145], %226 {strides = array<i32>} : memref<16x32xf32, #tpu.memory_space<vmem>>, vector<16x32xf32>,
    } else {
    }
    %c0 = arith.constant 0 : index
    %c0_1 = arith.constant 0 : index
    %3 = vector.load %arg18[%c0, %c0_1] : memref<16x32xf32, #tpu.memory_space<vmem>>, vector<16x32xf32>
    %4 = arith.truncf %3 : vector<16x32xf32> to vector<16x32xbf16>
    %cst = arith.constant 0.000000e+00 : f32
    %5 = vector.broadcast %cst : f32 to vector<16x32xf32>
    %c0_2 = arith.constant 0 : index
    %c0_3 = arith.constant 0 : index
    %c0_4 = arith.constant 0 : index
    %c0_5 = arith.constant 0 : index
    %6 = vector.load %arg2[%c0_2, %c0_3, %c0_4, %c0_5] : memref<1x4x32x32xbf16, #tpu.memory_space<vmem>>, vector<1x1x32x32xbf16>
    %7 = vector.shape_cast %6 : vector<1x1x32x32xbf16> to vector<32x32xbf16>
    %cst_6 = arith.constant dense<0.000000e+00> : vector<16x32xf32>
    %8 = tpu.matmul %4, %7, %cst_6 {dimension_numbers = #tpu.dot_dimension_numbers<[1], [0], [0], [1], [0, 0, 1, 1], [], []>} : vector<16x32xbf16>, vector<32x32xbf16>, vector<16x32xf32> -> vector<16x32xf32>
    %c0_7 = arith.constant 0 : index
    %c0_8 = arith.constant 0 : index
    %c0_9 = arith.constant 0 : index
    %c0_10 = arith.constant 0 : index
    %9 = vector.load %arg3[%c0_7, %c0_8, %c0_9, %c0_10] : memref<1x4x32x32xbf16, #tpu.memory_space<vmem>>, vector<1x1x32x32xbf16>
    %10 = vector.shape_cast %9 : vector<1x1x32x32xbf16> to vector<32x32xbf16>
    %cst_11 = arith.constant dense<0.000000e+00> : vector<16x32xf32>
    %11 = tpu.matmul %4, %10, %cst_11 {dimension_numbers = #tpu.dot_dimension_numbers<[1], [0], [0], [1], [0, 0, 1, 1], [], []>} : vector<16x32xbf16>, vector<32x32xbf16>, vector<16x32xf32> -> vector<16x32xf32>
    %c0_12 = arith.constant 0 : index
    %c0_13 = arith.constant 0 : index
    %c0_14 = arith.constant 0 : index
    %c0_15 = arith.constant 0 : index
    %12 = vector.load %arg4[%c0_12, %c0_13, %c0_14, %c0_15] : memref<1x4x32x32xbf16, #tpu.memory_space<vmem>>, vector<1x1x32x32xbf16>
    %13 = vector.shape_cast %12 : vector<1x1x32x32xbf16> to vector<32x32xbf16>
    %cst_16 = arith.constant dense<0.000000e+00> : vector<16x32xf32>
    %14 = tpu.matmul %4, %13, %cst_16 {dimension_numbers = #tpu.dot_dimension_numbers<[1], [0], [0], [1], [0, 0, 1, 1], [], []>} : vector<16x32xbf16>, vector<32x32xbf16>, vector<16x32xf32> -> vector<16x32xf32>
    %15 = vector.shape_cast %8 : vector<16x32xf32> to vector<2x8x32xf32>
    %16 = arith.truncf %15 : vector<2x8x32xf32> to vector<2x8x32xbf16>
    %17 = vector.shape_cast %11 : vector<16x32xf32> to vector<2x8x32xf32>
    %18 = arith.truncf %17 : vector<2x8x32xf32> to vector<2x8x32xbf16>
    %19 = vector.shape_cast %14 : vector<16x32xf32> to vector<2x8x32xf32>
    %20 = arith.truncf %19 : vector<2x8x32xf32> to vector<2x8x32xbf16>
    "tpu.trace_start"() <{level = 10 : i32, message = "bqd,bkd->bqk"}> : () -> ()
    %cst_17 = arith.constant dense<0.000000e+00> : vector<2x8x8xf32>
    %21 = tpu.matmul %16, %18, %cst_17 {dimension_numbers = #tpu.dot_dimension_numbers<[2], [2], [1], [1], [0, 0, 0, 1, 1, 1], [0], [0]>} : vector<2x8x32xbf16>, vector<2x8x32xbf16>, vector<2x8x8xf32> -> vector<2x8x8xf32>
    "tpu.trace_stop"() : () -> ()
    %cst_18 = arith.constant 0.176776692 : f32
    %22 = vector.broadcast %cst_18 : f32 to vector<2x8x8xf32>
    %23 = arith.mulf %21, %22 : vector<2x8x8xf32>
    %cst_19 = arith.constant dense<0xFF800000> : vector<2x8xf32>
    %24 = vector.multi_reduction <maximumf>, %23, %cst_19 [2] : vector<2x8x8xf32> to vector<2x8xf32>
    %25 = vector.shape_cast %24 : vector<2x8xf32> to vector<2x8x1xf32>
    %26 = vector.broadcast %25 : vector<2x8x1xf32> to vector<2x8x8xf32>
    %27 = arith.subf %23, %26 : vector<2x8x8xf32>
    %28 = math.exp %27 : vector<2x8x8xf32>
    %cst_20 = arith.constant dense<0.000000e+00> : vector<2x8xf32>
    %29 = vector.multi_reduction <add>, %28, %cst_20 [2] : vector<2x8x8xf32> to vector<2x8xf32>
    %30 = vector.shape_cast %29 : vector<2x8xf32> to vector<2x8x1xf32>
    %31 = tpu.reciprocal %30 {approx = true} : vector<2x8x1xf32> -> vector<2x8x1xf32>
    %32 = vector.broadcast %31 : vector<2x8x1xf32> to vector<2x8x8xf32>
    %33 = arith.mulf %28, %32 : vector<2x8x8xf32>
    %34 = arith.truncf %33 : vector<2x8x8xf32> to vector<2x8x8xbf16>
    "tpu.trace_start"() <{level = 10 : i32, message = "bqk,bkd->bqd"}> : () -> ()
    %cst_21 = arith.constant dense<0.000000e+00> : vector<2x8x32xf32>
    %35 = tpu.matmul %34, %20, %cst_21 {dimension_numbers = #tpu.dot_dimension_numbers<[2], [1], [1], [2], [0, 0, 0, 1, 1, 2], [0], [0]>} : vector<2x8x8xbf16>, vector<2x8x32xbf16>, vector<2x8x32xf32> -> vector<2x8x32xf32>
    "tpu.trace_stop"() : () -> ()
    %36 = vector.shape_cast %35 : vector<2x8x32xf32> to vector<16x32xf32>
    %37 = arith.truncf %36 : vector<16x32xf32> to vector<16x32xbf16>
    %c0_22 = arith.constant 0 : index
    %c0_23 = arith.constant 0 : index
    %c0_24 = arith.constant 0 : index
    %c0_25 = arith.constant 0 : index
    %38 = vector.load %arg5[%c0_22, %c0_23, %c0_24, %c0_25] : memref<1x4x32x32xbf16, #tpu.memory_space<vmem>>, vector<1x1x32x32xbf16>
    %39 = vector.shape_cast %38 : vector<1x1x32x32xbf16> to vector<32x32xbf16>
    %cst_26 = arith.constant dense<0.000000e+00> : vector<16x32xf32>
    %40 = tpu.matmul %37, %39, %cst_26 {dimension_numbers = #tpu.dot_dimension_numbers<[1], [0], [0], [1], [0, 0, 1, 1], [], []>} : vector<16x32xbf16>, vector<32x32xbf16>, vector<16x32xf32> -> vector<16x32xf32>
    %41 = arith.addf %5, %40 : vector<16x32xf32>
    %c0_27 = arith.constant 0 : index
    %c1 = arith.constant 1 : index
    %c0_28 = arith.constant 0 : index
    %c0_29 = arith.constant 0 : index
    %42 = vector.load %arg2[%c0_27, %c1, %c0_28, %c0_29] : memref<1x4x32x32xbf16, #tpu.memory_space<vmem>>, vector<1x1x32x32xbf16>
    %43 = vector.shape_cast %42 : vector<1x1x32x32xbf16> to vector<32x32xbf16>
    %cst_30 = arith.constant dense<0.000000e+00> : vector<16x32xf32>
    %44 = tpu.matmul %4, %43, %cst_30 {dimension_numbers = #tpu.dot_dimension_numbers<[1], [0], [0], [1], [0, 0, 1, 1], [], []>} : vector<16x32xbf16>, vector<32x32xbf16>, vector<16x32xf32> -> vector<16x32xf32>
    %c0_31 = arith.constant 0 : index
    %c1_32 = arith.constant 1 : index
    %c0_33 = arith.constant 0 : index
    %c0_34 = arith.constant 0 : index
    %45 = vector.load %arg3[%c0_31, %c1_32, %c0_33, %c0_34] : memref<1x4x32x32xbf16, #tpu.memory_space<vmem>>, vector<1x1x32x32xbf16>
    %46 = vector.shape_cast %45 : vector<1x1x32x32xbf16> to vector<32x32xbf16>
    %cst_35 = arith.constant dense<0.000000e+00> : vector<16x32xf32>
    %47 = tpu.matmul %4, %46, %cst_35 {dimension_numbers = #tpu.dot_dimension_numbers<[1], [0], [0], [1], [0, 0, 1, 1], [], []>} : vector<16x32xbf16>, vector<32x32xbf16>, vector<16x32xf32> -> vector<16x32xf32>
    %c0_36 = arith.constant 0 : index
    %c1_37 = arith.constant 1 : index
    %c0_38 = arith.constant 0 : index
    %c0_39 = arith.constant 0 : index
    %48 = vector.load %arg4[%c0_36, %c1_37, %c0_38, %c0_39] : memref<1x4x32x32xbf16, #tpu.memory_space<vmem>>, vector<1x1x32x32xbf16>
    %49 = vector.shape_cast %48 : vector<1x1x32x32xbf16> to vector<32x32xbf16>
    %cst_40 = arith.constant dense<0.000000e+00> : vector<16x32xf32>
    %50 = tpu.matmul %4, %49, %cst_40 {dimension_numbers = #tpu.dot_dimension_numbers<[1], [0], [0], [1], [0, 0, 1, 1], [], []>} : vector<16x32xbf16>, vector<32x32xbf16>, vector<16x32xf32> -> vector<16x32xf32>
    %51 = vector.shape_cast %44 : vector<16x32xf32> to vector<2x8x32xf32>
    %52 = arith.truncf %51 : vector<2x8x32xf32> to vector<2x8x32xbf16>
    %53 = vector.shape_cast %47 : vector<16x32xf32> to vector<2x8x32xf32>
    %54 = arith.truncf %53 : vector<2x8x32xf32> to vector<2x8x32xbf16>
    %55 = vector.shape_cast %50 : vector<16x32xf32> to vector<2x8x32xf32>
    %56 = arith.truncf %55 : vector<2x8x32xf32> to vector<2x8x32xbf16>
    "tpu.trace_start"() <{level = 10 : i32, message = "bqd,bkd->bqk"}> : () -> ()
    %cst_41 = arith.constant dense<0.000000e+00> : vector<2x8x8xf32>
    %57 = tpu.matmul %52, %54, %cst_41 {dimension_numbers = #tpu.dot_dimension_numbers<[2], [2], [1], [1], [0, 0, 0, 1, 1, 1], [0], [0]>} : vector<2x8x32xbf16>, vector<2x8x32xbf16>, vector<2x8x8xf32> -> vector<2x8x8xf32>
    "tpu.trace_stop"() : () -> ()
    %cst_42 = arith.constant 0.176776692 : f32
    %58 = vector.broadcast %cst_42 : f32 to vector<2x8x8xf32>
    %59 = arith.mulf %57, %58 : vector<2x8x8xf32>
    %cst_43 = arith.constant dense<0xFF800000> : vector<2x8xf32>
    %60 = vector.multi_reduction <maximumf>, %59, %cst_43 [2] : vector<2x8x8xf32> to vector<2x8xf32>
    %61 = vector.shape_cast %60 : vector<2x8xf32> to vector<2x8x1xf32>
    %62 = vector.broadcast %61 : vector<2x8x1xf32> to vector<2x8x8xf32>
    %63 = arith.subf %59, %62 : vector<2x8x8xf32>
    %64 = math.exp %63 : vector<2x8x8xf32>
    %cst_44 = arith.constant dense<0.000000e+00> : vector<2x8xf32>
    %65 = vector.multi_reduction <add>, %64, %cst_44 [2] : vector<2x8x8xf32> to vector<2x8xf32>
    %66 = vector.shape_cast %65 : vector<2x8xf32> to vector<2x8x1xf32>
    %67 = tpu.reciprocal %66 {approx = true} : vector<2x8x1xf32> -> vector<2x8x1xf32>
    %68 = vector.broadcast %67 : vector<2x8x1xf32> to vector<2x8x8xf32>
    %69 = arith.mulf %64, %68 : vector<2x8x8xf32>
    %70 = arith.truncf %69 : vector<2x8x8xf32> to vector<2x8x8xbf16>
    "tpu.trace_start"() <{level = 10 : i32, message = "bqk,bkd->bqd"}> : () -> ()
    %cst_45 = arith.constant dense<0.000000e+00> : vector<2x8x32xf32>
    %71 = tpu.matmul %70, %56, %cst_45 {dimension_numbers = #tpu.dot_dimension_numbers<[2], [1], [1], [2], [0, 0, 0, 1, 1, 2], [0], [0]>} : vector<2x8x8xbf16>, vector<2x8x32xbf16>, vector<2x8x32xf32> -> vector<2x8x32xf32>
    "tpu.trace_stop"() : () -> ()
    %72 = vector.shape_cast %71 : vector<2x8x32xf32> to vector<16x32xf32>
    %73 = arith.truncf %72 : vector<16x32xf32> to vector<16x32xbf16>
    %c0_46 = arith.constant 0 : index
    %c1_47 = arith.constant 1 : index
    %c0_48 = arith.constant 0 : index
    %c0_49 = arith.constant 0 : index
    %74 = vector.load %arg5[%c0_46, %c1_47, %c0_48, %c0_49] : memref<1x4x32x32xbf16, #tpu.memory_space<vmem>>, vector<1x1x32x32xbf16>
    %75 = vector.shape_cast %74 : vector<1x1x32x32xbf16> to vector<32x32xbf16>
    %cst_50 = arith.constant dense<0.000000e+00> : vector<16x32xf32>
    %76 = tpu.matmul %73, %75, %cst_50 {dimension_numbers = #tpu.dot_dimension_numbers<[1], [0], [0], [1], [0, 0, 1, 1], [], []>} : vector<16x32xbf16>, vector<32x32xbf16>, vector<16x32xf32> -> vector<16x32xf32>
    %77 = arith.addf %41, %76 : vector<16x32xf32>
    %c0_51 = arith.constant 0 : index
    %c2 = arith.constant 2 : index
    %c0_52 = arith.constant 0 : index
    %c0_53 = arith.constant 0 : index
    %78 = vector.load %arg2[%c0_51, %c2, %c0_52, %c0_53] : memref<1x4x32x32xbf16, #tpu.memory_space<vmem>>, vector<1x1x32x32xbf16>
    %79 = vector.shape_cast %78 : vector<1x1x32x32xbf16> to vector<32x32xbf16>
    %cst_54 = arith.constant dense<0.000000e+00> : vector<16x32xf32>
    %80 = tpu.matmul %4, %79, %cst_54 {dimension_numbers = #tpu.dot_dimension_numbers<[1], [0], [0], [1], [0, 0, 1, 1], [], []>} : vector<16x32xbf16>, vector<32x32xbf16>, vector<16x32xf32> -> vector<16x32xf32>
    %c0_55 = arith.constant 0 : index
    %c2_56 = arith.constant 2 : index
    %c0_57 = arith.constant 0 : index
    %c0_58 = arith.constant 0 : index
    %81 = vector.load %arg3[%c0_55, %c2_56, %c0_57, %c0_58] : memref<1x4x32x32xbf16, #tpu.memory_space<vmem>>, vector<1x1x32x32xbf16>
    %82 = vector.shape_cast %81 : vector<1x1x32x32xbf16> to vector<32x32xbf16>
    %cst_59 = arith.constant dense<0.000000e+00> : vector<16x32xf32>
    %83 = tpu.matmul %4, %82, %cst_59 {dimension_numbers = #tpu.dot_dimension_numbers<[1], [0], [0], [1], [0, 0, 1, 1], [], []>} : vector<16x32xbf16>, vector<32x32xbf16>, vector<16x32xf32> -> vector<16x32xf32>
    %c0_60 = arith.constant 0 : index
    %c2_61 = arith.constant 2 : index
    %c0_62 = arith.constant 0 : index
    %c0_63 = arith.constant 0 : index
    %84 = vector.load %arg4[%c0_60, %c2_61, %c0_62, %c0_63] : memref<1x4x32x32xbf16, #tpu.memory_space<vmem>>, vector<1x1x32x32xbf16>
    %85 = vector.shape_cast %84 : vector<1x1x32x32xbf16> to vector<32x32xbf16>
    %cst_64 = arith.constant dense<0.000000e+00> : vector<16x32xf32>
    %86 = tpu.matmul %4, %85, %cst_64 {dimension_numbers = #tpu.dot_dimension_numbers<[1], [0], [0], [1], [0, 0, 1, 1], [], []>} : vector<16x32xbf16>, vector<32x32xbf16>, vector<16x32xf32> -> vector<16x32xf32>
    %87 = vector.shape_cast %80 : vector<16x32xf32> to vector<2x8x32xf32>
    %88 = arith.truncf %87 : vector<2x8x32xf32> to vector<2x8x32xbf16>
    %89 = vector.shape_cast %83 : vector<16x32xf32> to vector<2x8x32xf32>
    %90 = arith.truncf %89 : vector<2x8x32xf32> to vector<2x8x32xbf16>
    %91 = vector.shape_cast %86 : vector<16x32xf32> to vector<2x8x32xf32>
    %92 = arith.truncf %91 : vector<2x8x32xf32> to vector<2x8x32xbf16>
    "tpu.trace_start"() <{level = 10 : i32, message = "bqd,bkd->bqk"}> : () -> ()
    %cst_65 = arith.constant dense<0.000000e+00> : vector<2x8x8xf32>
    %93 = tpu.matmul %88, %90, %cst_65 {dimension_numbers = #tpu.dot_dimension_numbers<[2], [2], [1], [1], [0, 0, 0, 1, 1, 1], [0], [0]>} : vector<2x8x32xbf16>, vector<2x8x32xbf16>, vector<2x8x8xf32> -> vector<2x8x8xf32>
    "tpu.trace_stop"() : () -> ()
    %cst_66 = arith.constant 0.176776692 : f32
    %94 = vector.broadcast %cst_66 : f32 to vector<2x8x8xf32>
    %95 = arith.mulf %93, %94 : vector<2x8x8xf32>
    %cst_67 = arith.constant dense<0xFF800000> : vector<2x8xf32>
    %96 = vector.multi_reduction <maximumf>, %95, %cst_67 [2] : vector<2x8x8xf32> to vector<2x8xf32>
    %97 = vector.shape_cast %96 : vector<2x8xf32> to vector<2x8x1xf32>
    %98 = vector.broadcast %97 : vector<2x8x1xf32> to vector<2x8x8xf32>
    %99 = arith.subf %95, %98 : vector<2x8x8xf32>
    %100 = math.exp %99 : vector<2x8x8xf32>
    %cst_68 = arith.constant dense<0.000000e+00> : vector<2x8xf32>
    %101 = vector.multi_reduction <add>, %100, %cst_68 [2] : vector<2x8x8xf32> to vector<2x8xf32>
    %102 = vector.shape_cast %101 : vector<2x8xf32> to vector<2x8x1xf32>
    %103 = tpu.reciprocal %102 {approx = true} : vector<2x8x1xf32> -> vector<2x8x1xf32>
    %104 = vector.broadcast %103 : vector<2x8x1xf32> to vector<2x8x8xf32>
    %105 = arith.mulf %100, %104 : vector<2x8x8xf32>
    %106 = arith.truncf %105 : vector<2x8x8xf32> to vector<2x8x8xbf16>
    "tpu.trace_start"() <{level = 10 : i32, message = "bqk,bkd->bqd"}> : () -> ()
    %cst_69 = arith.constant dense<0.000000e+00> : vector<2x8x32xf32>
    %107 = tpu.matmul %106, %92, %cst_69 {dimension_numbers = #tpu.dot_dimension_numbers<[2], [1], [1], [2], [0, 0, 0, 1, 1, 2], [0], [0]>} : vector<2x8x8xbf16>, vector<2x8x32xbf16>, vector<2x8x32xf32> -> vector<2x8x32xf32>
    "tpu.trace_stop"() : () -> ()
    %108 = vector.shape_cast %107 : vector<2x8x32xf32> to vector<16x32xf32>
    %109 = arith.truncf %108 : vector<16x32xf32> to vector<16x32xbf16>
    %c0_70 = arith.constant 0 : index
    %c2_71 = arith.constant 2 : index
    %c0_72 = arith.constant 0 : index
    %c0_73 = arith.constant 0 : index
    %110 = vector.load %arg5[%c0_70, %c2_71, %c0_72, %c0_73] : memref<1x4x32x32xbf16, #tpu.memory_space<vmem>>, vector<1x1x32x32xbf16>
    %111 = vector.shape_cast %110 : vector<1x1x32x32xbf16> to vector<32x32xbf16>
    %cst_74 = arith.constant dense<0.000000e+00> : vector<16x32xf32>
    %112 = tpu.matmul %109, %111, %cst_74 {dimension_numbers = #tpu.dot_dimension_numbers<[1], [0], [0], [1], [0, 0, 1, 1], [], []>} : vector<16x32xbf16>, vector<32x32xbf16>, vector<16x32xf32> -> vector<16x32xf32>
    %113 = arith.addf %77, %112 : vector<16x32xf32>
    %c0_75 = arith.constant 0 : index
    %c3 = arith.constant 3 : index
    %c0_76 = arith.constant 0 : index
    %c0_77 = arith.constant 0 : index
    %114 = vector.load %arg2[%c0_75, %c3, %c0_76, %c0_77] : memref<1x4x32x32xbf16, #tpu.memory_space<vmem>>, vector<1x1x32x32xbf16>
    %115 = vector.shape_cast %114 : vector<1x1x32x32xbf16> to vector<32x32xbf16>
    %cst_78 = arith.constant dense<0.000000e+00> : vector<16x32xf32>
    %116 = tpu.matmul %4, %115, %cst_78 {dimension_numbers = #tpu.dot_dimension_numbers<[1], [0], [0], [1], [0, 0, 1, 1], [], []>} : vector<16x32xbf16>, vector<32x32xbf16>, vector<16x32xf32> -> vector<16x32xf32>
    %c0_79 = arith.constant 0 : index
    %c3_80 = arith.constant 3 : index
    %c0_81 = arith.constant 0 : index
    %c0_82 = arith.constant 0 : index
    %117 = vector.load %arg3[%c0_79, %c3_80, %c0_81, %c0_82] : memref<1x4x32x32xbf16, #tpu.memory_space<vmem>>, vector<1x1x32x32xbf16>
    %118 = vector.shape_cast %117 : vector<1x1x32x32xbf16> to vector<32x32xbf16>
    %cst_83 = arith.constant dense<0.000000e+00> : vector<16x32xf32>
    %119 = tpu.matmul %4, %118, %cst_83 {dimension_numbers = #tpu.dot_dimension_numbers<[1], [0], [0], [1], [0, 0, 1, 1], [], []>} : vector<16x32xbf16>, vector<32x32xbf16>, vector<16x32xf32> -> vector<16x32xf32>
    %c0_84 = arith.constant 0 : index
    %c3_85 = arith.constant 3 : index
    %c0_86 = arith.constant 0 : index
    %c0_87 = arith.constant 0 : index
    %120 = vector.load %arg4[%c0_84, %c3_85, %c0_86, %c0_87] : memref<1x4x32x32xbf16, #tpu.memory_space<vmem>>, vector<1x1x32x32xbf16>
    %121 = vector.shape_cast %120 : vector<1x1x32x32xbf16> to vector<32x32xbf16>
    %cst_88 = arith.constant dense<0.000000e+00> : vector<16x32xf32>
    %122 = tpu.matmul %4, %121, %cst_88 {dimension_numbers = #tpu.dot_dimension_numbers<[1], [0], [0], [1], [0, 0, 1, 1], [], []>} : vector<16x32xbf16>, vector<32x32xbf16>, vector<16x32xf32> -> vector<16x32xf32>
    %123 = vector.shape_cast %116 : vector<16x32xf32> to vector<2x8x32xf32>
    %124 = arith.truncf %123 : vector<2x8x32xf32> to vector<2x8x32xbf16>
    %125 = vector.shape_cast %119 : vector<16x32xf32> to vector<2x8x32xf32>
    %126 = arith.truncf %125 : vector<2x8x32xf32> to vector<2x8x32xbf16>
    %127 = vector.shape_cast %122 : vector<16x32xf32> to vector<2x8x32xf32>
    %128 = arith.truncf %127 : vector<2x8x32xf32> to vector<2x8x32xbf16>
    "tpu.trace_start"() <{level = 10 : i32, message = "bqd,bkd->bqk"}> : () -> ()
    %cst_89 = arith.constant dense<0.000000e+00> : vector<2x8x8xf32>
    %129 = tpu.matmul %124, %126, %cst_89 {dimension_numbers = #tpu.dot_dimension_numbers<[2], [2], [1], [1], [0, 0, 0, 1, 1, 1], [0], [0]>} : vector<2x8x32xbf16>, vector<2x8x32xbf16>, vector<2x8x8xf32> -> vector<2x8x8xf32>
    "tpu.trace_stop"() : () -> ()
    %cst_90 = arith.constant 0.176776692 : f32
    %130 = vector.broadcast %cst_90 : f32 to vector<2x8x8xf32>
    %131 = arith.mulf %129, %130 : vector<2x8x8xf32>
    %cst_91 = arith.constant dense<0xFF800000> : vector<2x8xf32>
    %132 = vector.multi_reduction <maximumf>, %131, %cst_91 [2] : vector<2x8x8xf32> to vector<2x8xf32>
    %133 = vector.shape_cast %132 : vector<2x8xf32> to vector<2x8x1xf32>
    %134 = vector.broadcast %133 : vector<2x8x1xf32> to vector<2x8x8xf32>
    %135 = arith.subf %131, %134 : vector<2x8x8xf32>
    %136 = math.exp %135 : vector<2x8x8xf32>
    %cst_92 = arith.constant dense<0.000000e+00> : vector<2x8xf32>
    %137 = vector.multi_reduction <add>, %136, %cst_92 [2] : vector<2x8x8xf32> to vector<2x8xf32>
    %138 = vector.shape_cast %137 : vector<2x8xf32> to vector<2x8x1xf32>
    %139 = tpu.reciprocal %138 {approx = true} : vector<2x8x1xf32> -> vector<2x8x1xf32>
    %140 = vector.broadcast %139 : vector<2x8x1xf32> to vector<2x8x8xf32>
    %141 = arith.mulf %136, %140 : vector<2x8x8xf32>
    %142 = arith.truncf %141 : vector<2x8x8xf32> to vector<2x8x8xbf16>
    "tpu.trace_start"() <{level = 10 : i32, message = "bqk,bkd->bqd"}> : () -> ()
    %cst_93 = arith.constant dense<0.000000e+00> : vector<2x8x32xf32>
    %143 = tpu.matmul %142, %128, %cst_93 {dimension_numbers = #tpu.dot_dimension_numbers<[2], [1], [1], [2], [0, 0, 0, 1, 1, 2], [0], [0]>} : vector<2x8x8xbf16>, vector<2x8x32xbf16>, vector<2x8x32xf32> -> vector<2x8x32xf32>
    "tpu.trace_stop"() : () -> ()
    %144 = vector.shape_cast %143 : vector<2x8x32xf32> to vector<16x32xf32>
    %145 = arith.truncf %144 : vector<16x32xf32> to vector<16x32xbf16>
    %c0_94 = arith.constant 0 : index
    %c3_95 = arith.constant 3 : index
    %c0_96 = arith.constant 0 : index
    %c0_97 = arith.constant 0 : index
    %146 = vector.load %arg5[%c0_94, %c3_95, %c0_96, %c0_97] : memref<1x4x32x32xbf16, #tpu.memory_space<vmem>>, vector<1x1x32x32xbf16>
    %147 = vector.shape_cast %146 : vector<1x1x32x32xbf16> to vector<32x32xbf16>
    %cst_98 = arith.constant dense<0.000000e+00> : vector<16x32xf32>
    %148 = tpu.matmul %145, %147, %cst_98 {dimension_numbers = #tpu.dot_dimension_numbers<[1], [0], [0], [1], [0, 0, 1, 1], [], []>} : vector<16x32xbf16>, vector<32x32xbf16>, vector<16x32xf32> -> vector<16x32xf32>
    %149 = arith.addf %113, %148 : vector<16x32xf32>
    %c0_99 = arith.constant 0 : index
    %c0_100 = arith.constant 0 : index
    %c0_101 = arith.constant 0 : index
    %150 = vector.load %arg6[%c0_99, %c0_100, %c0_101] : memref<1x1x32xf32, #tpu.memory_space<vmem>>, vector<1x1x32xf32>
    %151 = vector.shape_cast %150 : vector<1x1x32xf32> to vector<1x32xf32>
    %152 = vector.broadcast %151 : vector<1x32xf32> to vector<16x32xf32>
    %153 = arith.addf %149, %152 : vector<16x32xf32>
    %154 = arith.addf %153, %3 : vector<16x32xf32>
    %c0_102 = arith.constant 0 : index
    %c0_103 = arith.constant 0 : index
    %c0_104 = arith.constant 0 : index
    %155 = vector.load %arg7[%c0_102, %c0_103, %c0_104] : memref<1x1x32xf32, #tpu.memory_space<vmem>>, vector<1x1x32xf32>
    %156 = vector.shape_cast %155 : vector<1x1x32xf32> to vector<1x32xf32>
    %c0_105 = arith.constant 0 : index
    %c0_106 = arith.constant 0 : index
    %c0_107 = arith.constant 0 : index
    %157 = vector.load %arg8[%c0_105, %c0_106, %c0_107] : memref<1x1x32xf32, #tpu.memory_space<vmem>>, vector<1x1x32xf32>
    %158 = vector.shape_cast %157 : vector<1x1x32xf32> to vector<1x32xf32>
    %cst_108 = arith.constant dense<0.000000e+00> : vector<16xf32>
    %159 = vector.multi_reduction <add>, %154, %cst_108 [1] : vector<16x32xf32> to vector<16xf32>
    %160 = vector.shape_cast %159 : vector<16xf32> to vector<16x1xf32>
    %cst_109 = arith.constant 3.200000e+01 : f32
    %161 = vector.broadcast %cst_109 : f32 to vector<16x1xf32>
    %162 = arith.divf %160, %161 : vector<16x1xf32>
    %163 = vector.broadcast %162 : vector<16x1xf32> to vector<16x32xf32>
    %164 = arith.subf %154, %163 : vector<16x32xf32>
    %165 = arith.mulf %164, %164 : vector<16x32xf32>
    %cst_110 = arith.constant dense<0.000000e+00> : vector<16xf32>
    %166 = vector.multi_reduction <add>, %165, %cst_110 [1] : vector<16x32xf32> to vector<16xf32>
    %167 = vector.shape_cast %166 : vector<16xf32> to vector<16x1xf32>
    %cst_111 = arith.constant 3.200000e+01 : f32
    %168 = vector.broadcast %cst_111 : f32 to vector<16x1xf32>
    %169 = arith.divf %167, %168 : vector<16x1xf32>
    %cst_112 = arith.constant 9.99999974E-6 : f32
    %170 = vector.broadcast %cst_112 : f32 to vector<16x1xf32>
    %171 = arith.addf %169, %170 : vector<16x1xf32>
    %172 = math.rsqrt %171 : vector<16x1xf32>
    %173 = vector.broadcast %172 : vector<16x1xf32> to vector<16x32xf32>
    %174 = arith.mulf %164, %173 : vector<16x32xf32>
    %175 = vector.broadcast %156 : vector<1x32xf32> to vector<16x32xf32>
    %176 = arith.mulf %174, %175 : vector<16x32xf32>
    %177 = vector.broadcast %158 : vector<1x32xf32> to vector<16x32xf32>
    %178 = arith.addf %176, %177 : vector<16x32xf32>
    %179 = arith.truncf %178 : vector<16x32xf32> to vector<16x32xbf16>
    %c0_113 = arith.constant 0 : index
    %c0_114 = arith.constant 0 : index
    %c0_115 = arith.constant 0 : index
    %180 = vector.load %arg9[%c0_113, %c0_114, %c0_115] : memref<1x32x128xbf16, #tpu.memory_space<vmem>>, vector<1x32x128xbf16>
    %181 = vector.shape_cast %180 : vector<1x32x128xbf16> to vector<32x128xbf16>
    %cst_116 = arith.constant dense<0.000000e+00> : vector<16x128xf32>
    %182 = tpu.matmul %179, %181, %cst_116 {dimension_numbers = #tpu.dot_dimension_numbers<[1], [0], [0], [1], [0, 0, 1, 1], [], []>} : vector<16x32xbf16>, vector<32x128xbf16>, vector<16x128xf32> -> vector<16x128xf32>
    %c0_117 = arith.constant 0 : index
    %c0_118 = arith.constant 0 : index
    %c0_119 = arith.constant 0 : index
    %183 = vector.load %arg10[%c0_117, %c0_118, %c0_119] : memref<1x1x128xf32, #tpu.memory_space<vmem>>, vector<1x1x128xf32>
    %184 = vector.shape_cast %183 : vector<1x1x128xf32> to vector<1x128xf32>
    %185 = vector.broadcast %184 : vector<1x128xf32> to vector<16x128xf32>
    %186 = arith.addf %182, %185 : vector<16x128xf32>
    %cst_120 = arith.constant 0.000000e+00 : f32
    %187 = vector.broadcast %cst_120 : f32 to vector<16x128xf32>
    %188 = arith.maximumf %186, %187 : vector<16x128xf32>
    %189 = arith.truncf %188 : vector<16x128xf32> to vector<16x128xbf16>
    %c0_121 = arith.constant 0 : index
    %c0_122 = arith.constant 0 : index
    %c0_123 = arith.constant 0 : index
    %190 = vector.load %arg11[%c0_121, %c0_122, %c0_123] : memref<1x128x32xbf16, #tpu.memory_space<vmem>>, vector<1x128x32xbf16>
    %191 = vector.shape_cast %190 : vector<1x128x32xbf16> to vector<128x32xbf16>
    %cst_124 = arith.constant dense<0.000000e+00> : vector<16x32xf32>
    %192 = tpu.matmul %189, %191, %cst_124 {dimension_numbers = #tpu.dot_dimension_numbers<[1], [0], [0], [1], [0, 0, 1, 1], [], []>} : vector<16x128xbf16>, vector<128x32xbf16>, vector<16x32xf32> -> vector<16x32xf32>
    %c0_125 = arith.constant 0 : index
    %c0_126 = arith.constant 0 : index
    %c0_127 = arith.constant 0 : index
    %193 = vector.load %arg12[%c0_125, %c0_126, %c0_127] : memref<1x1x32xf32, #tpu.memory_space<vmem>>, vector<1x1x32xf32>
    %194 = vector.shape_cast %193 : vector<1x1x32xf32> to vector<1x32xf32>
    %195 = vector.broadcast %194 : vector<1x32xf32> to vector<16x32xf32>
    %196 = arith.addf %192, %195 : vector<16x32xf32>
    %197 = arith.addf %196, %178 : vector<16x32xf32>
    %c0_128 = arith.constant 0 : index
    %c0_129 = arith.constant 0 : index
    %c0_130 = arith.constant 0 : index
    %198 = vector.load %arg13[%c0_128, %c0_129, %c0_130] : memref<1x1x32xf32, #tpu.memory_space<vmem>>, vector<1x1x32xf32>
    %199 = vector.shape_cast %198 : vector<1x1x32xf32> to vector<1x32xf32>
    %c0_131 = arith.constant 0 : index
    %c0_132 = arith.constant 0 : index
    %c0_133 = arith.constant 0 : index
    %200 = vector.load %arg14[%c0_131, %c0_132, %c0_133] : memref<1x1x32xf32, #tpu.memory_space<vmem>>, vector<1x1x32xf32>
    %201 = vector.shape_cast %200 : vector<1x1x32xf32> to vector<1x32xf32>
    %cst_134 = arith.constant dense<0.000000e+00> : vector<16xf32>
    %202 = vector.multi_reduction <add>, %197, %cst_134 [1] : vector<16x32xf32> to vector<16xf32>
    %203 = vector.shape_cast %202 : vector<16xf32> to vector<16x1xf32>
    %cst_135 = arith.constant 3.200000e+01 : f32
    %204 = vector.broadcast %cst_135 : f32 to vector<16x1xf32>
    %205 = arith.divf %203, %204 : vector<16x1xf32>
    %206 = vector.broadcast %205 : vector<16x1xf32> to vector<16x32xf32>
    %207 = arith.subf %197, %206 : vector<16x32xf32>
    %208 = arith.mulf %207, %207 : vector<16x32xf32>
    %cst_136 = arith.constant dense<0.000000e+00> : vector<16xf32>
    %209 = vector.multi_reduction <add>, %208, %cst_136 [1] : vector<16x32xf32> to vector<16xf32>
    %210 = vector.shape_cast %209 : vector<16xf32> to vector<16x1xf32>
    %cst_137 = arith.constant 3.200000e+01 : f32
    %211 = vector.broadcast %cst_137 : f32 to vector<16x1xf32>
    %212 = arith.divf %210, %211 : vector<16x1xf32>
    %cst_138 = arith.constant 9.99999974E-6 : f32
    %213 = vector.broadcast %cst_138 : f32 to vector<16x1xf32>
    %214 = arith.addf %212, %213 : vector<16x1xf32>
    %215 = math.rsqrt %214 : vector<16x1xf32>
    %216 = vector.broadcast %215 : vector<16x1xf32> to vector<16x32xf32>
    %217 = arith.mulf %207, %216 : vector<16x32xf32>
    %218 = vector.broadcast %199 : vector<1x32xf32> to vector<16x32xf32>
    %219 = arith.mulf %217, %218 : vector<16x32xf32>
    %220 = vector.broadcast %201 : vector<1x32xf32> to vector<16x32xf32>
    %221 = arith.addf %219, %220 : vector<16x32xf32>
    %c0_139 = arith.constant 0 : index
    %c0_140 = arith.constant 0 : index
    %222 = vector.load %arg18[%c0_139, %c0_140] : memref<16x32xf32, #tpu.memory_space<vmem>>, vector<16x32xf32>
    tpu.vector_store %arg18[%c0_139, %c0_140], %221 {strides = array<i32>} : memref<16x32xf32, #tpu.memory_space<vmem>>, vector<16x32xf32>,
    %c1_i32 = arith.constant 1 : i32
    %223 = arith.cmpi eq, %arg0, %c1_i32 : i32
    %224 = arith.extui %223 : i1 to i32
    %c0_i32_141 = arith.constant 0 : i32
    %225 = arith.cmpi ne, %224, %c0_i32_141 : i32
    scf.if %225 {
      %226 = vector.shape_cast %221 : vector<16x32xf32> to vector<2x8x32xf32>
      %cst_142 = arith.constant dense<0.000000e+00> : vector<2x32xf32>
      %227 = vector.multi_reduction <add>, %226, %cst_142 [1] : vector<2x8x32xf32> to vector<2x32xf32>
      %cst_143 = arith.constant 8.000000e+00 : f32
      %228 = vector.broadcast %cst_143 : f32 to vector<2x32xf32>
      %229 = arith.divf %227, %228 : vector<2x32xf32>
      %c0_144 = arith.constant 0 : index
      %c0_145 = arith.constant 0 : index
      %230 = vector.load %arg15[%c0_144, %c0_145] : memref<32x4xf32, #tpu.memory_space<vmem>>, vector<32x4xf32>
      %cst_146 = arith.constant dense<0.000000e+00> : vector<2x4xf32>
      %231 = tpu.matmul %229, %230, %cst_146 {dimension_numbers = #tpu.dot_dimension_numbers<[1], [0], [0], [1], [0, 0, 1, 1], [], []>} : vector<2x32xf32>, vector<32x4xf32>, vector<2x4xf32> -> vector<2x4xf32>
      %c0_147 = arith.constant 0 : index
      %c0_148 = arith.constant 0 : index
      %232 = vector.load %arg16[%c0_147, %c0_148] : memref<1x4xf32, #tpu.memory_space<vmem>>, vector<1x4xf32>
      %233 = vector.broadcast %232 : vector<1x4xf32> to vector<2x4xf32>
      %234 = arith.addf %231, %233 : vector<2x4xf32>
      %cst_149 = arith.constant dense<0xFF800000> : vector<2xf32>
      %235 = vector.multi_reduction <maximumf>, %234, %cst_149 [1] : vector<2x4xf32> to vector<2xf32>
      %236 = vector.shape_cast %235 : vector<2xf32> to vector<2x1xf32>
      %237 = vector.broadcast %236 : vector<2x1xf32> to vector<2x4xf32>
      %238 = arith.subf %234, %237 : vector<2x4xf32>
      %239 = math.exp %238 : vector<2x4xf32>
      %cst_150 = arith.constant dense<0.000000e+00> : vector<2xf32>
      %240 = vector.multi_reduction <add>, %239, %cst_150 [1] : vector<2x4xf32> to vector<2xf32>
      %241 = vector.shape_cast %240 : vector<2xf32> to vector<2x1xf32>
      %242 = math.log %241 : vector<2x1xf32>
      %243 = arith.addf %236, %242 : vector<2x1xf32>
      %244 = vector.broadcast %243 : vector<2x1xf32> to vector<2x4xf32>
      %245 = arith.subf %234, %244 : vector<2x4xf32>
      %c0_151 = arith.constant 0 : index
      %c0_152 = arith.constant 0 : index
      %246 = vector.load %arg17[%c0_151, %c0_152] : memref<2x4xf32, #tpu.memory_space<vmem>>, vector<2x4xf32>
      tpu.vector_store %arg17[%c0_151, %c0_152], %245 {strides = array<i32>} : memref<2x4xf32, #tpu.memory_space<vmem>>, vector<2x4xf32>,
    } else {
    }
    return
  }
  func.func @transform_0(%arg0: i32) -> (i32, i32) {
    %c0_i32 = arith.constant 0 : i32
    %c0_i32_0 = arith.constant 0 : i32
    %c0_i32_1 = arith.constant 0 : i32
    return %c0_i32, %c0_i32_0 : i32, i32
  }
  func.func @transform_1(%arg0: i32) -> (i32, i32, i32, i32) {
    %c0_i32 = arith.constant 0 : i32
    %c0_i32_0 = arith.constant 0 : i32
    %c0_i32_1 = arith.constant 0 : i32
    %c0_i32_2 = arith.constant 0 : i32
    return %arg0, %c0_i32, %c0_i32_0, %c0_i32_1 : i32, i32, i32, i32
  }
  func.func @transform_2(%arg0: i32) -> (i32, i32, i32, i32) {
    %c0_i32 = arith.constant 0 : i32
    %c0_i32_0 = arith.constant 0 : i32
    %c0_i32_1 = arith.constant 0 : i32
    %c0_i32_2 = arith.constant 0 : i32
    return %arg0, %c0_i32, %c0_i32_0, %c0_i32_1 : i32, i32, i32, i32
  }
  func.func @transform_3(%arg0: i32) -> (i32, i32, i32, i32) {
    %c0_i32 = arith.constant 0 : i32
    %c0_i32_0 = arith.constant 0 : i32
    %c0_i32_1 = arith.constant 0 : i32
    %c0_i32_2 = arith.constant 0 : i32
    return %arg0, %c0_i32, %c0_i32_0, %c0_i32_1 : i32, i32, i32, i32
  }
  func.func @transform_4(%arg0: i32) -> (i32, i32, i32, i32) {
    %c0_i32 = arith.constant 0 : i32
    %c0_i32_0 = arith.constant 0 : i32
    %c0_i32_1 = arith.constant 0 : i32
    %c0_i32_2 = arith.constant 0 : i32
    return %arg0, %c0_i32, %c0_i32_0, %c0_i32_1 : i32, i32, i32, i32
  }
  func.func @transform_5(%arg0: i32) -> (i32, i32, i32) {
    %c0_i32 = arith.constant 0 : i32
    %c0_i32_0 = arith.constant 0 : i32
    %c0_i32_1 = arith.constant 0 : i32
    return %arg0, %c0_i32, %c0_i32_0 : i32, i32, i32
  }
  func.func @transform_6(%arg0: i32) -> (i32, i32, i32) {
    %c0_i32 = arith.constant 0 : i32
    %c0_i32_0 = arith.constant 0 : i32
    %c0_i32_1 = arith.constant 0 : i32
    return %arg0, %c0_i32, %c0_i32_0 : i32, i32, i32
  }
  func.func @transform_7(%arg0: i32) -> (i32, i32, i32) {
    %c0_i32 = arith.constant 0 : i32
    %c0_i32_0 = arith.constant 0 : i32
    %c0_i32_1 = arith.constant 0 : i32
    return %arg0, %c0_i32, %c0_i32_0 : i32, i32, i32
  }
  func.func @transform_8(%arg0: i32) -> (i32, i32, i32) {
    %c0_i32 = arith.constant 0 : i32
    %c0_i32_0 = arith.constant 0 : i32
    %c0_i32_1 = arith.constant 0 : i32
    return %arg0, %c0_i32, %c0_i32_0 : i32, i32, i32
  }
  func.func @transform_9(%arg0: i32) -> (i32, i32, i32) {
    %c0_i32 = arith.constant 0 : i32
    %c0_i32_0 = arith.constant 0 : i32
    %c0_i32_1 = arith.constant 0 : i32
    return %arg0, %c0_i32, %c0_i32_0 : i32, i32, i32
  }
  func.func @transform_10(%arg0: i32) -> (i32, i32, i32) {
    %c0_i32 = arith.constant 0 : i32
    %c0_i32_0 = arith.constant 0 : i32
    %c0_i32_1 = arith.constant 0 : i32
    return %arg0, %c0_i32, %c0_i32_0 : i32, i32, i32
  }
  func.func @transform_11(%arg0: i32) -> (i32, i32, i32) {
    %c0_i32 = arith.constant 0 : i32
    %c0_i32_0 = arith.constant 0 : i32
    %c0_i32_1 = arith.constant 0 : i32
    return %arg0, %c0_i32, %c0_i32_0 : i32, i32, i32
  }
  func.func @transform_12(%arg0: i32) -> (i32, i32, i32) {
    %c0_i32 = arith.constant 0 : i32
    %c0_i32_0 = arith.constant 0 : i32
    %c0_i32_1 = arith.constant 0 : i32
    return %arg0, %c0_i32, %c0_i32_0 : i32, i32, i32
  }
  func.func @transform_13(%arg0: i32) -> (i32, i32, i32) {
    %c0_i32 = arith.constant 0 : i32
    %c0_i32_0 = arith.constant 0 : i32
    %c0_i32_1 = arith.constant 0 : i32
    return %arg0, %c0_i32, %c0_i32_0 : i32, i32, i32
  }
  func.func @transform_14(%arg0: i32) -> (i32, i32) {
    %c0_i32 = arith.constant 0 : i32
    %c0_i32_0 = arith.constant 0 : i32
    %c0_i32_1 = arith.constant 0 : i32
    return %c0_i32, %c0_i32_0 : i32, i32
  }
  func.func @transform_15(%arg0: i32) -> (i32, i32) {
    %c0_i32 = arith.constant 0 : i32
    %c0_i32_0 = arith.constant 0 : i32
    %c0_i32_1 = arith.constant 0 : i32
    return %c0_i32, %c0_i32_0 : i32, i32
  }
  func.func @transform_16(%arg0: i32) -> (i32, i32) {
    %c0_i32 = arith.constant 0 : i32
    %c0_i32_0 = arith.constant 0 : i32
    %c0_i32_1 = arith.constant 0 : i32
    return %c0_i32, %c0_i32_0 : i32, i32
  }
}

</mosaic_0001>

<bundles_post_ra>
// kernel: tpu_custom_call.1
= control target key start
LH: loop header
LB: loop body
LE: loop exit
PB: predicated region body
PF: predicated region fallthrough
CT: control target
= control target key end

     0   :  { %s4760_s0 = inlined_call_operand.vmem [shape: f32[16,32], index: 0, kind: input, shape index: {}]   ;;  %s4761_s1 = inlined_call_operand.vmem [shape: bf16[2,4,32,32], index: 1, kind: input, shape index: {}]   ;;  %s4762_s2 = inlined_call_operand.hbm [shape: bf16[2,4,32,32], index: 2, kind: input, shape index: {}]   ;;  %s4763_s3 = inlined_call_operand.hbm [shape: bf16[2,4,32,32], index: 3, kind: input, shape index: {}]   ;;  %s4764_s4 = inlined_call_operand.hbm [shape: bf16[2,4,32,32], index: 4, kind: input, shape index: {}]   ;;  %s4765_s5 = inlined_call_operand.vmem [shape: f32[2,1,32], index: 5, kind: input, shape index: {}]   ;;  %s4766_s6 = inlined_call_operand.vmem [shape: f32[2,1,32], index: 6, kind: input, shape index: {}]   ;;  %s4767_s7 = inlined_call_operand.vmem [shape: f32[2,1,32], index: 7, kind: input, shape index: {}]   ;;  %s4768_s8 = inlined_call_operand.vmem [shape: bf16[2,32,128], index: 8, kind: input, shape index: {}]   ;;  %s4769_s9 = inlined_call_operand.vmem [shape: f32[2,1,128], index: 9, kind: input, shape index: {}]   ;;  %s4770_s10 = inlined_call_operand.vmem [shape: bf16[2,128,32], index: 10, kind: input, shape index: {}]   ;;  %s4771_s11 = inlined_call_operand.vmem [shape: f32[2,1,32], index: 11, kind: input, shape index: {}]   ;;  %s4772_s12 = inlined_call_operand.vmem [shape: f32[2,1,32], index: 12, kind: input, shape index: {}]   ;;  %s4773_s13 = inlined_call_operand.vmem [shape: f32[2,1,32], index: 13, kind: input, shape index: {}]   ;;  %s4774_s14 = inlined_call_operand.vmem [shape: f32[32,4], index: 14, kind: input, shape index: {}]   ;;  %s4775_s15 = inlined_call_operand.vmem [shape: f32[1,4], index: 15, kind: input, shape index: {}]   ;;  %s4776_s16 = inlined_call_operand.hbm [shape: f32[2,4], index: 16, kind: output, shape index: {}]  }
   0x1   :  { %4790 = sst [smem:[#allocation17_spill]] %s4760_s0 }
   0x2   :  { %4791 = sst [smem:[#allocation18_spill]] %s4761_s1 }
   0x3   :  { %4792 = sst [smem:[#allocation19_spill]] %s4762_s2 }
   0x4   :  { %4793 = sst [smem:[#allocation20_spill]] %s4763_s3 }
   0x5   :  { %4794 = sst [smem:[#allocation21_spill]] %s4764_s4 }
   0x6   :  { %4795 = sst [smem:[#allocation22_spill]] %s4767_s7 }
   0x7   :  { %4796 = sst [smem:[#allocation23_spill]] %s4768_s8 }
   0x8   :  { %4797 = sst [smem:[#allocation24_spill]] %s4770_s10 }
   0x9   :  { %4798 = sst [smem:[#allocation25_spill]] %s4771_s11 }
   0xa   :  { %4799 = sst [smem:[#allocation26_spill]] %s4772_s12 }
   0xb   :  { %4800 = sst [smem:[#allocation27_spill]] %s4773_s13 }
   0xc   :  { %4801 = sst [smem:[#allocation28_spill]] %s4774_s14 }
   0xd   :  { %4802 = sst [smem:[#allocation29_spill]] %s4775_s15 }
   0xe   :  { %4803 = sst [smem:[#allocation30_spill]] %s4776_s16 }
   0xf   :  { %21 = vsyncpa [#allocation4], 0 }
  0x10   :  { %23 = vsyncpa [#allocation4 + $0x1], 0 }
  0x11   :  { %24 = vsyncpa [#allocation7], 0 }
  0x12   :  { %26 = vsyncpa [#allocation7 + $0x1], 0 }
  0x13   :  { %27 = vsyncpa [#allocation5], 0  ;;  %s4138_s21 = smov 0   ;;  %s4140_s22 = smov 0  }
  0x14   :  { %s4142_s23 = smov 0   ;;  %s4144_s24 = smov 0  }
  0x15 LB: > { %4804 = sst [smem:[#allocation13_spill]] %s4032_s22  ;;  %s4157_s25 = sadd.s32 4294967295, %s4040_s24   ;;  %s4040_s24 = sphi %s4144_s24, %s4841_s24   ;;  %s4036_s23 = sphi %s4142_s23, %s4844_s23   ;;  %s4032_s22 = sphi %s4140_s22, %s4843_s22   ;;  %s4028_s21 = sphi %s4138_s21, %s4842_s21  }
  0x16   : > { %4805 = sst [smem:[#allocation14_spill]] %s4036_s23  ;;  %s4160_s26 = sadd.s32 1, %s4040_s24  }
  0x17   : > { %4806 = sst [smem:[#allocation15_spill]] %s4160_s26  ;;  %s84_s27 = ssub.s32 %s4040_s24, %s4160_s26 }
  0x18   : > { %s87_s28 = sadd.s32 1, %s4036_s23  ;;  %p85_p0 = scmp.eq.s32.totalorder %s84_s27, 0 }
  0x19   : > { %p94_p1 = scmp.ne.s32.totalorder %s4036_s23, %s4032_s22  ;;  %p95_p2 = scmp.eq.s32.totalorder %s4040_s24, 0 }
  0x1a   : > { %p100_p3 = scmp.ne.s32.totalorder %s4032_s22, %s4028_s21  ;;  %p101_p5 = scmp.eq.s32.totalorder %s4157_s25, 0 }
  0x1b   : > { %s4170_s29 = scalar_select %p85_p0, %s4036_s23, %s87_s28  }
  0x1c   : > { %p96_p4 = por %p95_p2, %p94_p1  ;;  %p3751_p6 = scmp.lt.s32.totalorder %s4040_s24, 2 }
  0x1d   : > { %4807 = sst [smem:[#allocation16_spill]] %s4170_s29  ;;  %p4174_p7 = por %p101_p5, %p100_p3 }
  0x1e   : > { %s4778_s0 = sand.u32 1, %s4036_s23   ;;  %s4184_s18 = sshll.u32 %s4040_s24, 10 }
  0x1f   : > { %s4808_s30 = scalar_select %p4174_p7, 1, 0 }
  0x20   : > { %s4181_s17 = sshll.u32 %s4778_s0, 6  ;;  %p4186_p8 = pnand %p3751_p6, %p96_p4 }
  0x21   : > { %s511_s20 = sand.u32 1, %s4040_s24   ;;  %s4810_s3 = sld [smem:[#allocation20_spill]] }
  0x22   : > { %s515_s0 = scalar_lea.vmem [#allocation6], %s4181_s17  ;;  %s4202_s26 = scalar_lea.sflag [#allocation7], %s511_s20 }
  0x23   : > { %s522_s29 = sshll.u32 %s515_s0, 4  ;;  %p4208_p12 = pneg %p4186_p8  ;;  %s4199_s29 = int_to_ptr.vmem [resolvable:$true] %s522_s29 }
  0x27   : > { %s4195_s28 = scalar_lea.hbm %s4810_s3, %s4184_s18  ;;  %s3887_s0 = scalar_lea.hbm %s4810_s3, 2048 }
  0x28   : > { %s3882_s16 = scalar_lea.hbm %s4195_s28, 1024  ;;  %p3888_p1 = scmp.lt.u32.totalorder %s4195_s28, %s4810_s3 }
  0x29   : > { %p3883_p11 = scmp.ne.s32.totalorder %s4195_s28, %s3882_s16  ;;  %p3889_p2 = scmp.lt.u32.totalorder %s3887_s0, %s3882_s16 }
  0x2a   : > { %p3891_p4 = scmp.lt.u32.totalorder %s3882_s16, %s4195_s28 }
  0x2b   : > { %p3885_p13 = pnand %p4208_p12, %p3883_p11  ;;  %p3890_p3 = por %p3889_p2, %p3888_p1 }
  0x2d   : > { %p3886_p0 = pneg %p3885_p13  ;;  %p3892_p5 = por %p3891_p4, %p3890_p3 }
  0x2f   : > { %p3893_p6 = pnand %p3892_p5, %p3886_p0 }
  0x31   : > { %3896 = shalt.err (!%p3893_p6)
}
  0x32   : > { %s3897_s20 = scalar_lea.vmem %s4199_s29, 1024  ;;  %s4042_s21 = smov [#allocation6]  }
  0x33   : > { %p3898_p11 = scmp.ne.s32.totalorder %s4199_s29, %s3897_s20  ;;  %s3902_s27 = sshll.u32 %s4042_s21, 4  ;;  %s3903_s27 = int_to_ptr.vmem [resolvable:$false] %s3902_s27 }
  0x34   : > { %s3904_s13 = scalar_lea.vmem %s3903_s27, 2048  ;;  %p3905_p10 = scmp.lt.s32.totalorder %s4199_s29, %s3903_s27 }
  0x35   : > { %p3900_p13 = pnand %p3898_p11, %p4208_p12  ;;  %p3906_p7 = scmp.lt.s32.totalorder %s3904_s13, %s3897_s20 }
  0x37   : > { %p3901_p9 = pneg %p3900_p13  ;;  %p3907_p1 = por %p3906_p7, %p3905_p10 }
  0x39   : > { %p3908_p2 = pnand %p3907_p1, %p3901_p9 }
  0x3b   : > { %3911 = shalt.err (!%p3908_p2)
}
  0x3c   : > { %s4784_s14 = smov 64   ;;  %s4786_s16 = smov 4  }
  0x3d   : > { %3747 = dma.hbm_to_vmem [thread:$0]  (!%p4186_p8), %s4195_s28, 1024, %s4199_s29, %s4202_s26, %s4784_s14, %s4784_s14, %s4786_s16  }
  0x3e   : > { %p4812_p7 = scmp.lt.s32.totalorder %s4040_s24, 3  ;;  %p4813_p9 = scmp.ge.s32.totalorder %s4040_s24, 1 }
  0x3f   : > { %s4815_s2 = sld [smem:[#allocation19_spill]]  ;;  %s494_s13 = scalar_lea.vmem [#allocation3], %s4181_s17 }
  0x40   : > { %p4239_p10 = pnand %p4813_p9, %p4812_p7  ;;  %s501_s3 = sshll.u32 %s494_s13, 4  ;;  %s4250_s3 = int_to_ptr.vmem [resolvable:$true] %s501_s3 }
  0x41   : > { %s4816_s4 = sld [smem:[#allocation21_spill]]  ;;  %s4817_s14 = sand.u32 1, %s4036_s23  }
  0x42   : > { %s4814_s0 = scalar_select %p4239_p10, 1, 0 }
  0x43   : > { %s4260_s16 = scalar_lea.sflag [#allocation4], %s4817_s14 }
  0x45   : > { %s4247_s27 = scalar_lea.hbm %s4815_s2, %s4184_s18  ;;  %s3917_s11 = scalar_lea.hbm %s4815_s2, 2048 }
  0x46   : > { %s3912_s12 = scalar_lea.hbm %s4247_s27, 1024  ;;  %p3918_p5 = scmp.lt.u32.totalorder %s4247_s27, %s4815_s2 }
  0x47   : > { %s4256_s24 = scalar_lea.hbm %s4816_s4, %s4184_s18  ;;  %p3913_p0 = scmp.ne.s32.totalorder %s4247_s27, %s3912_s12 }
  0x48   : > { %p3919_p6 = scmp.lt.u32.totalorder %s3917_s11, %s3912_s12  ;;  %p3921_p13 = scmp.lt.u32.totalorder %s3912_s12, %s4247_s27 }
  0x49   : > { %p3915_p3 = pnand %p3913_p0, %p4208_p12 }
  0x4a   : > { %p3920_p11 = por %p3919_p6, %p3918_p5 }
  0x4b   : > { %p3916_p4 = pneg %p3915_p3 }
  0x4c   : > { %p3922_p1 = por %p3921_p13, %p3920_p11 }
  0x4e   : > { %p3923_p2 = pnand %p3922_p1, %p3916_p4 }
  0x50   : > { %3926 = shalt.err (!%p3923_p2)
}
  0x51   : > { %s3927_s18 = scalar_lea.vmem %s4250_s3, 1024  ;;  %s4045_s14 = smov [#allocation3]  }
  0x52   : > { %p3928_p7 = scmp.ne.s32.totalorder %s4250_s3, %s3927_s18  ;;  %s3932_s29 = sshll.u32 %s4045_s14, 4  ;;  %s3933_s29 = int_to_ptr.vmem [resolvable:$false] %s3932_s29 }
  0x53   : > { %s3934_s10 = scalar_lea.vmem %s3933_s29, 2048  ;;  %p3935_p3 = scmp.lt.s32.totalorder %s4250_s3, %s3933_s29 }
  0x54   : > { %p3930_p9 = pnand %p3928_p7, %p4208_p12  ;;  %p3936_p10 = scmp.lt.s32.totalorder %s3934_s10, %s3927_s18 }
  0x56   : > { %p3931_p0 = pneg %p3930_p9  ;;  %p3937_p5 = por %p3936_p10, %p3935_p3 }
  0x58   : > { %p3938_p6 = pnand %p3937_p5, %p3931_p0 }
  0x5a   : > { %3941 = shalt.err (!%p3938_p6)
}
  0x5b   : > { %s4818_s11 = smov 4   ;;  %s4819_s12 = smov 64  }
  0x5c   : > { %3744 = dma.hbm_to_vmem [thread:$0]  (!%p4186_p8), %s4247_s27, 1024, %s4250_s3, %s4260_s16, %s4819_s12, %s4819_s12, %s4818_s11  }
  0x5d   : > { %s536_s28 = scalar_lea.vmem [#allocation8], %s4181_s17  ;;  %s3942_s21 = scalar_lea.hbm %s4256_s24, 1024 }
  0x5e   : > { %s543_s20 = sshll.u32 %s536_s28, 4  ;;  %p3943_p10 = scmp.ne.s32.totalorder %s4256_s24, %s3942_s21  ;;  %s4288_s20 = int_to_ptr.vmem [resolvable:$true] %s543_s20 }
  0x5f   : > { %s3947_s14 = scalar_lea.hbm %s4816_s4, 2048  ;;  %p3948_p13 = scmp.lt.u32.totalorder %s4256_s24, %s4816_s4 }
  0x60   : > { %p3945_p4 = pnand %p3943_p10, %p4208_p12  ;;  %p3949_p1 = scmp.lt.u32.totalorder %s3947_s14, %s3942_s21 }
  0x61   : > { %p3951_p7 = scmp.lt.u32.totalorder %s3942_s21, %s4256_s24 }
  0x62   : > { %p3946_p11 = pneg %p3945_p4  ;;  %p3950_p2 = por %p3949_p1, %p3948_p13 }
  0x64   : > { %p3952_p9 = por %p3951_p7, %p3950_p2 }
  0x66   : > { %p3953_p0 = pnand %p3952_p9, %p3946_p11 }
  0x68   : > { %3956 = shalt.err (!%p3953_p0)
}
  0x69   : > { %s3957_s3 = scalar_lea.vmem %s4288_s20, 1024  ;;  %s4046_s17 = smov [#allocation8]  }
  0x6a   : > { %p3958_p3 = scmp.ne.s32.totalorder %s4288_s20, %s3957_s3  ;;  %s3962_s16 = sshll.u32 %s4046_s17, 4  ;;  %s3963_s16 = int_to_ptr.vmem [resolvable:$false] %s3962_s16 }
  0x6b   : > { %s3964_s27 = scalar_lea.vmem %s3963_s16, 2048  ;;  %p3965_p10 = scmp.lt.s32.totalorder %s4288_s20, %s3963_s16 }
  0x6c   : > { %p3960_p5 = pnand %p3958_p3, %p4208_p12  ;;  %p3966_p4 = scmp.lt.s32.totalorder %s3964_s27, %s3957_s3 }
  0x6e   : > { %p3961_p6 = pneg %p3960_p5  ;;  %p3967_p13 = por %p3966_p4, %p3965_p10 }
  0x70   : > { %p3968_p1 = pnand %p3967_p13, %p3961_p6 }
  0x72   : > { %3971 = shalt.err (!%p3968_p1)
}
  0x73   : > { %3750 = dma.hbm_to_vmem [thread:$0]  (!%p4186_p8), %s4256_s24, 1024, %s4288_s20, %s4202_s26, %s4819_s12, %s4819_s12, %s4818_s11  }
  0x74   : > { %p4820_p12 = scmp.ne.s32.totalorder %s4814_s0, 0 }
  0x75   : > { %s615_s15 = sand.u32 (!%p4820_p12), 1, %s4032_s22   ;;  %p4821_p11 = scmp.ne.s32.totalorder (!%p4820_p12), %s4808_s30, 0 }
  0x76   : > { %613 = sbr.rel (%p4820_p12) target bundleno = 5707 (0x164b), region = 84  ;;  %s3212_s28 = sshll.u32 (!%p4820_p12), %s615_s15, 6 }
  0x77   : > { %s616_s21 = scalar_lea.sflag (!%p4820_p12), [#allocation4], %s615_s15  ;;  %s4318_s13 = scalar_lea.vmem (!%p4820_p12), [#allocation3], %s3212_s28 }
  0x7d   : > { %4015 = dma.done.wait (%p4821_p11), %s616_s21, 1024  }
  0x7e   : > { %4017 = vsyncadd (%p4821_p11), %s616_s21, 4294966272  ;;  %s624_s19 = sand.u32 1, %s4157_s25   ;;  %s4325_s26 = scalar_lea.vmem [#allocation6], %s3212_s28 }
  0x7f   : > { %s625_s18 = scalar_lea.sflag [#allocation7], %s624_s19 }
  0x80   : > { %4019 = dma.done.wait (%p4821_p11), %s625_s18, 2048  }
  0x81   : > { %4021 = vsyncadd (%p4821_p11), %s625_s18, 4294965248  ;;  %p727_p8 = scmp.lt.s32.totalorder %s4157_s25, 1  ;;  %s4822_s1 = sld [smem:[#allocation18_spill]] }
  0x82   : > { %s4824_s8 = sld [smem:[#allocation23_spill]]  ;;  %s4826_s17 = sld [smem:[#allocation25_spill]] }
  0x83   : > { %s4333_s0 = scalar_select %p727_p8, %s4157_s25, 1 }
  0x84   : > { %s4827_s23 = sld [smem:[#allocation26_spill]]  ;;  %s4828_s18 = sld [smem:[#allocation27_spill]] }
  0x85   : > { %s3362_s24 = sshll.u32 %s4333_s0, 6  ;;  %s3363_s21 = sshll.u32 %s4333_s0, 4 }
  0x86   : > { %s748_s20 = scalar_lea.vmem %s4769_s9, %s4333_s0  ;;  %s4380_s7 = scalar_lea.vmem [#allocation8], %s3212_s28 }
  0x87   : > { %s4343_s29 = scalar_lea.vmem %s4822_s1, %s3362_s24  ;;  %s4825_s1 = sld [smem:[#allocation24_spill]] }
  0x88   : > { %s4357_s2 = scalar_lea.vmem %s4824_s8, %s3363_s21  ;;  %s756_s16 = scalar_lea.vmem %s4826_s17, %s4333_s0 }
  0x89   : > { %p3221_p2 = scmp.ne.s32.totalorder %s4157_s25, 0 }
  0x8a   : > { %s759_s22 = scalar_lea.vmem %s4827_s23, %s4333_s0  ;;  %s762_s8 = scalar_lea.vmem %s4828_s18, %s4333_s0  ;;  %vm770_vm0 = vcmask (!%p3221_p2), 261120  }
  0x8b   : > { %767 = sbr.rel (%p3221_p2) target bundleno = 150 (0x96), region = 100 }
  0x8d   : > { %s4366_s4 = scalar_lea.vmem %s4825_s1, %s3362_s24  ;;  %s4829_s24 = sld [smem:[#allocation17_spill]] (!%p3221_p2) }
  0x93   : > { %s4830_s11 = smov %s4829_s24  ;;  %v768_v0 = vld [vmem:[%s4829_s24] sm:$0xff] }
  0x94   : > { %v769_v1 = vld [vmem:[%s4830_s11 + $0x8] sm:$0xff]  ;;  %771 = vst.msk [vmem:[#allocation2] sm:$0xff] %vm770_vm0, %v768_v0 }
  0x95   : > { %772 = vst.msk [vmem:[#allocation2 + $0x8] sm:$0xff] %vm770_vm0, %v769_v1 }
  0x96 PF: > { %v3794_v2 = vld [vmem:[%s4343_s29] sm:$0xff]   ;;  %v4047_v3 = vmov 0.0   ;;  %v3795_v4 = vld [vmem:[%s4343_s29 + $0x8] sm:$0xff]   ;;  %vm4048_vm1 = vmmov 0   ;;  %vm792_vm2 = vcmask 261120   ;;  %v3796_v7 = vld [vmem:[%s4318_s13] sm:$0xff]   ;;  %s4831_s28 = scalar_lea.vmem %s4765_s5, %s4333_s0 }
  0x97   : > { %3462 = vmatprep.subr.bf16.mxu0 %v4047_v3  ;;  %3486 = vmatprep.subr.bf16.mxu1 %v4047_v3  ;;  %v3797_v9 = vld [vmem:[%s4318_s13 + $0x8] sm:$0xff]   ;;  %v3798_v10 = vld [vmem:[%s4325_s26] sm:$0xff]   ;;  %vm1079_vm3 = vcmask 1043456   ;;  %vm1051_vm4 = vcmask 64512   ;;  %v3800_v60 = vld [vmem:[%s4318_s13 + $0x10] sm:$0xff]   ;;  %s4833_s14 = sld [smem:[#allocation22_spill]] }
  0x98   : > { %3463 = vmatpush3.bf16.msra.mxu0 %v3794_v2  ;;  %3466 = vmatprep.mubr.msk.bf16.mxu0 %vm4048_vm1, %v4047_v3  ;;  %v3799_v11 = vld [vmem:[%s4325_s26 + $0x8] sm:$0xff]   ;;  %v3801_v0 = vld [vmem:[%s4318_s13 + $0x18] sm:$0xff]   ;;  %v3802_v1 = vld [vmem:[%s4343_s29 + $0x10] sm:$0xff]   ;;  %p3352_p7 = scmp.ne.s32.totalorder %s4157_s25, 1 }
  0x99   : > { %3464 = vmatprep.subr.bf16.mxu0 %v4047_v3  ;;  %3488 = vmatprep.mubr.msk.bf16.mxu1 %vm4048_vm1, %v4047_v3  ;;  %s4838_s17 = sld [smem:[#allocation28_spill]] (!%p3352_p7)  ;;  %vm4050_vm5 = vmmov (!%p3352_p7), 0   ;;  %vm2911_vm6 = vcmask (!%p3352_p7), 1041409   ;;  %vm2985_vm7 = vcmask (!%p3352_p7), 25600  }
  0x9b   : > { %v773_v5 = vld [vmem:[#allocation2] sm:$0xff] }
  0x9c   : > { %v774_v6 = vld [vmem:[#allocation2 + $0x8] sm:$0xff]  ;;  %3465 = vmatpush3.bf16.msra.mxu0 %v3795_v4  ;;  %v3803_v4 = vld [vmem:[%s4343_s29 + $0x18] sm:$0xff]  }
  0x9d   : > { %v4399_v8 = vpack.c.bf16 %v774_v6, %v773_v5  ;;  %3470 = vmatprep.subr.bf16.mxu0 %v4047_v3  ;;  %v3804_v5 = vld [vmem:[%s4325_s26 + $0x10] sm:$0xff]   ;;  %v3805_v6 = vld [vmem:[%s4325_s26 + $0x18] sm:$0xff]   ;;  %s4834_s10 = scalar_lea.vmem %s4833_s14, %s4333_s0 }
  0x9f   : > { %3467 = vmatmul.mubr.msk.bf16.vlgmr.msra.gmra.mrb[0].mxu0 %vm792_vm2, %v4399_v8 }
  0xa0   : > { %3471 = vmatpush3.bf16.msra.mxu0 %v3796_v7  ;;  %3474 = vmatprep.mubr.msk.bf16.mxu0 %vm4048_vm1, %v4047_v3 }
  0xa1   : > { %3472 = vmatprep.subr.bf16.mxu0 %v4047_v3 }
  0xa4   : > { %3473 = vmatpush3.bf16.msra.mxu0 %v3797_v9 }
  0xa5   : > { %3478 = vmatprep.subr.bf16.mxu0 %v4047_v3 }
  0xa7   : > { %3475 = vmatmul.mubr.msk.bf16.vlgmr.msra.gmra.mrb[4].mxu0 %vm792_vm2, %v4399_v8 }
  0xa8   : > { %3482 = vmatprep.mubr.msk.bf16.mxu0 %vm4048_vm1, %v4047_v3  ;;  %3479 = vmatpush3.bf16.msra.mxu0 %v3798_v10 }
  0xa9   : > { %3480 = vmatprep.subr.bf16.mxu0 %v4047_v3 }
  0xac   : > { %3481 = vmatpush3.bf16.msra.mxu0 %v3799_v11 }
  0xad   : > { %3492 = vmatprep.subr.bf16.mxu0 %v4047_v3 }
  0xaf   : > { %3483 = vmatmul.mubr.msk.bf16.vlgmr.msra.gmra.mrb[8].mxu0 %vm792_vm2, %v4399_v8 }
  0xb0   : > { %3494 = vmatprep.mubr.msk.bf16.mxu0 %vm4048_vm1, %v4047_v3 }
 0x172   : > { %v830_v12 = vpop.f32.mrb[0].mxu0 }
 0x173   : > { %v3468_v13 = vpop.f32.mrb[1].mxu0  ;;  %v951_v24 = vpack.c.bf16 %v830_v12, %v830_v12 }
 0x174   : > { %v833_v14 = vpop.f32.mrb[2].mxu0 }
 0x175   : > { %v3469_v15 = vpop.f32.mrb[3].mxu0  ;;  %v952_v25 = vpack.c.bf16 %v833_v14, %v833_v14 }
 0x17a   : > { %v887_v16 = vpop.f32.mrb[4].mxu0 }
 0x17b   : > { %v953_v17 = vpack.c.bf16 %v887_v16, %v887_v16  ;;  %v3476_v18 = vpop.f32.mrb[5].mxu0 }
 0x17c   : > { %v890_v19 = vpop.f32.mrb[6].mxu0 }
 0x17d   : > { %v954_v20 = vpack.c.bf16 %v890_v19, %v890_v19  ;;  %v3477_v21 = vpop.f32.mrb[7].mxu0  ;;  %v961_v22 = vsel %vm792_vm2, %v953_v17, 0 }
 0x17e   : > { %3487 = vmatpush3.bf16.xpose.msra.mxu1 %v961_v22 }
 0x17f   : > { %v1007_v23 = vsel %vm792_vm2, %v954_v20, 0  ;;  %3498 = vmatprep.subr.bf16.mxu1 %v4047_v3 }
 0x180   : > { %3493 = vmatpush3.bf16.xpose.msra.mxu0 %v1007_v23 }
 0x181   : > { %3504 = vmatprep.subr.bf16.mxu0 %v4047_v3 }
 0x182   : > { %v944_v26 = vpop.f32.mrb[8].mxu0 }
 0x183   : > { %v955_v27 = vpack.c.bf16 %v944_v26, %v944_v26  ;;  %v3484_v28 = vpop.f32.mrb[9].mxu0 }
 0x184   : > { %v947_v29 = vpop.f32.mrb[10].mxu0 }
 0x185   : > { %3489 = vmatmul.mubr.msk.bf16.vlgmr.msra.gmra.mrb[0].mxu1 %vm792_vm2, %v951_v24  ;;  %v1081_v30 = vsel %vm1079_vm3, %v955_v27, 0  ;;  %v956_v31 = vpack.c.bf16 %v947_v29, %v947_v29  ;;  %v3485_v32 = vpop.f32.mrb[11].mxu0 }
 0x186   : > { %3500 = vmatprep.mubr.msk.bf16.mxu1 %vm4048_vm1, %v4047_v3  ;;  %3499 = vmatpush3.bf16.msra.mxu1 %v1081_v30 }
 0x187   : > { %3495 = vmatmul.mubr.msk.bf16.vlgmr.msra.gmra.mrb[12].mxu0 %vm792_vm2, %v952_v25  ;;  %v1127_v33 = vsel %vm1079_vm3, %v956_v31, 0  ;;  %3510 = vmatprep.subr.bf16.mxu1 %v4047_v3 }
 0x188   : > { %3506 = vmatprep.mubr.msk.bf16.mxu0 %vm4048_vm1, %v4047_v3  ;;  %3505 = vmatpush3.bf16.msra.mxu0 %v1127_v33 }
 0x189   : > { %3518 = vmatprep.subr.bf16.mxu0 %v4047_v3 }
 0x258   : > { %v997_v34 = vpop.f32.mrb[0].mxu1 }
 0x259   : > { %v3490_v35 = vpop.f32.mrb[1].mxu1  ;;  %v1049_v42 = vmul.f32 0.17677669, %v997_v34 }
 0x25a   : > { %v1000_v36 = vpop.f32.mrb[2].mxu1  ;;  %v1043_v37 = vpop.f32.mrb[12].mxu0 }
 0x25b   : > { %v1050_v38 = vmul.f32 0.17677669, %v1043_v37  ;;  %v3491_v39 = vpop.f32.mrb[3].mxu1  ;;  %v3496_v40 = vpop.f32.mrb[13].mxu0  ;;  %v1052_v45 = vsel %vm1051_vm4, %v1049_v42, -inf }
 0x25c   : > { %v1046_v41 = vpop.f32.mrb[14].mxu0 }
 0x25d   : > { %v3497_v43 = vpop.f32.mrb[15].mxu0  ;;  %v1055_v44 = vsel %vm1051_vm4, %v1050_v38, -inf }
 0x25e   : > { %1056 = vmax.xlane.f32.xlu0 %v1055_v44 }
 0x262   : > { %1053 = vmax.xlane.f32.xlu0 %v1052_v45 }
 0x2eb   : > { %v1057_v46 = vpop.xlane.xlu0 %1056 }
 0x2ec   : > { %v1059_v47 = vsub.f32 %v1050_v38, %v1057_v46 }
 0x2ee   : > { %v1062_v48 = vmul.f32 1.442695, %v1059_v47 }
 0x2ef   : > { %v1054_v49 = vpop.xlane.xlu0 %1053 }
 0x2f0   : > { %3836 = vpow2.f32 %v1062_v48  ;;  %v1058_v50 = vsub.f32 %v1049_v42, %v1054_v49 }
 0x2f2   : > { %v1060_v51 = vmul.f32 1.442695, %v1058_v50 }
 0x2f4   : > { %3838 = vpow2.f32 %v1060_v51 }
 0x2fa   : > { %v3837_v52 = vpop.eup %3836 }
 0x2fb   : > { %v1067_v53 = vsel %vm1051_vm4, %v3837_v52, 0.0 }
 0x2fc   : > { %1068 = vadd.xlane.f32.xlu1 %v1067_v53 }
 0x2fe   : > { %v3839_v54 = vpop.eup %3838 }
 0x2ff   : > { %v1064_v55 = vsel %vm1051_vm4, %v3839_v54, 0.0 }
 0x300   : > { %1065 = vadd.xlane.f32.xlu1 %v1064_v55 }
 0x389   : > { %v1069_v56 = vpop.xlane.xlu1 %1068 }
 0x38a   : > { %3840 = vrcp.f32 %v1069_v56 }
 0x38d   : > { %v1066_v57 = vpop.xlane.xlu1 %1065 }
 0x38e   : > { %3842 = vrcp.f32 %v1066_v57 }
 0x394   : > { %v3841_v58 = vpop.eup %3840 }
 0x395   : > { %v1073_v59 = vmul.f32 %v3841_v58, %v3837_v52 }
 0x397   : > { %v1075_v61 = vpack.c.bf16 %v1073_v59, %v1073_v59 }
 0x398   : > { %v3843_v62 = vpop.eup %3842 }
 0x399   : > { %v1072_v63 = vmul.f32 %v3843_v62, %v3839_v54  ;;  %3507 = vmatmul.mubr.msk.bf16.vlgmr.msra.gmra.mrb[16].mxu0 %vm1051_vm4, %v1075_v61 }
 0x39a   : > { %3519 = vmatpush3.bf16.msra.mxu0 %v3800_v60  ;;  %3522 = vmatprep.mubr.msk.bf16.mxu0 %vm4048_vm1, %v4047_v3 }
 0x39b   : > { %v1074_v2 = vpack.c.bf16 %v1072_v63, %v1072_v63  ;;  %3520 = vmatprep.subr.bf16.mxu0 %v4047_v3 }
 0x39d   : > { %3501 = vmatmul.mubr.msk.bf16.vlgmr.msra.gmra.mrb[4].mxu1 %vm1051_vm4, %v1074_v2  ;;  %v3809_v2 = vld [vmem:[%s4380_s7 + $0x10] sm:$0xff]  }
 0x39e   : > { %3521 = vmatpush3.bf16.msra.mxu0 %v3801_v0  ;;  %3511 = vmatpush3.bf16.msra.mxu1 %v3802_v1 }
 0x39f   : > { %3512 = vmatprep.subr.bf16.mxu1 %v4047_v3  ;;  %3514 = vmatprep.mubr.msk.bf16.mxu1 %vm4048_vm1, %v4047_v3 }
 0x3a0   : > { %3534 = vmatprep.subr.bf16.mxu0 %v4047_v3 }
 0x3a1   : > { %3523 = vmatmul.mubr.msk.bf16.vlgmr.msra.gmra.mrb[20].mxu0 %vm792_vm2, %v4399_v8 }
 0x3a2   : > { %3513 = vmatpush3.bf16.msra.mxu1 %v3803_v4  ;;  %3536 = vmatprep.mubr.msk.bf16.mxu0 %vm4048_vm1, %v4047_v3 }
 0x3a3   : > { %3526 = vmatprep.subr.bf16.mxu1 %v4047_v3 }
 0x3a5   : > { %3515 = vmatmul.mubr.msk.bf16.vlgmr.msra.gmra.mrb[8].mxu1 %vm792_vm2, %v4399_v8 }
 0x3a6   : > { %3530 = vmatprep.mubr.msk.bf16.mxu1 %vm4048_vm1, %v4047_v3  ;;  %3527 = vmatpush3.bf16.msra.mxu1 %v3804_v5 }
 0x3a7   : > { %3528 = vmatprep.subr.bf16.mxu1 %v4047_v3 }
 0x3aa   : > { %3529 = vmatpush3.bf16.msra.mxu1 %v3805_v6  ;;  %v3806_v6 = vld [vmem:[%s4380_s7] sm:$0xff]  }
 0x3ab   : > { %3540 = vmatprep.subr.bf16.mxu1 %v4047_v3 }
 0x3ad   : > { %3531 = vmatmul.mubr.msk.bf16.vlgmr.msra.gmra.mrb[12].mxu1 %vm792_vm2, %v4399_v8 }
 0x3ae   : > { %3542 = vmatprep.mubr.msk.bf16.mxu1 %vm4048_vm1, %v4047_v3 }
 0x46c   : > { %v4469_v7 = vpop.f32.mrb[16].mxu0 }
 0x46d   : > { %v3508_v9 = vpop.f32.mrb[17].mxu0 }
 0x46e   : > { %v1166_v10 = vpop.f32.mrb[18].mxu0 }
 0x46f   : > { %v3509_v11 = vpop.f32.mrb[19].mxu0  ;;  %v3807_v10 = vld [vmem:[%s4380_s7 + $0x8] sm:$0xff]  }
 0x470   : > { %v4471_v12 = vpop.f32.mrb[4].mxu1  ;;  %v3808_v11 = vld [vmem:[%s4318_s13 + $0x20] sm:$0xff]  }
 0x471   : > { %v1169_v13 = vpack.c.bf16 %v4469_v7, %v4471_v12  ;;  %v3502_v14 = vpop.f32.mrb[5].mxu1  ;;  %v3811_v7 = vld [vmem:[%s4380_s7 + $0x18] sm:$0xff]  }
 0x472   : > { %v1120_v15 = vpop.f32.mrb[6].mxu1  ;;  %v3810_v14 = vld [vmem:[%s4318_s13 + $0x28] sm:$0xff]  }
 0x473   : > { %v3503_v16 = vpop.f32.mrb[7].mxu1 }
 0x474   : > { %v1283_v17 = vpop.f32.mrb[20].mxu0 }
 0x475   : > { %v1350_v18 = vpack.c.bf16 %v1283_v17, %v1283_v17  ;;  %v3524_v19 = vpop.f32.mrb[21].mxu0  ;;  %v3812_v17 = vld [vmem:[%s4343_s29 + $0x20] sm:$0xff]  }
 0x476   : > { %v1286_v20 = vpop.f32.mrb[22].mxu0 }
 0x477   : > { %v1358_v21 = vsel %vm792_vm2, %v1350_v18, 0  ;;  %v1351_v22 = vpack.c.bf16 %v1286_v20, %v1286_v20  ;;  %v3525_v23 = vpop.f32.mrb[23].mxu0 }
 0x478   : > { %3535 = vmatpush3.bf16.xpose.msra.mxu0 %v1358_v21  ;;  %v1225_v24 = vpop.f32.mrb[8].mxu1  ;;  %v3813_v23 = vld [vmem:[%s4343_s29 + $0x28] sm:$0xff]  }
 0x479   : > { %v1404_v25 = vsel %vm792_vm2, %v1351_v22, 0  ;;  %v3516_v26 = vpop.f32.mrb[9].mxu1  ;;  %3546 = vmatprep.subr.bf16.mxu0 %v4047_v3  ;;  %v1348_v28 = vpack.c.bf16 %v1225_v24, %v1225_v24 }
 0x47a   : > { %3541 = vmatpush3.bf16.xpose.msra.mxu1 %v1404_v25  ;;  %v1228_v27 = vpop.f32.mrb[10].mxu1  ;;  %v3814_v25 = vld [vmem:[%s4325_s26 + $0x20] sm:$0xff]  }
 0x47b   : > { %v3517_v29 = vpop.f32.mrb[11].mxu1  ;;  %3552 = vmatprep.subr.bf16.mxu1 %v4047_v3  ;;  %v1349_v30 = vpack.c.bf16 %v1228_v27, %v1228_v27 }
 0x47c   : > { %v3815_v29 = vld [vmem:[%s4325_s26 + $0x28] sm:$0xff]  }
 0x47f   : > { %3537 = vmatmul.mubr.msk.bf16.vlgmr.msra.gmra.mrb[24].mxu0 %vm792_vm2, %v1348_v28 }
 0x480   : > { %3548 = vmatprep.mubr.msk.bf16.mxu0 %vm4048_vm1, %v4047_v3  ;;  %v1341_v31 = vpop.f32.mrb[12].mxu1 }
 0x481   : > { %3543 = vmatmul.mubr.msk.bf16.vlgmr.msra.gmra.mrb[16].mxu1 %vm792_vm2, %v1349_v30  ;;  %v1352_v32 = vpack.c.bf16 %v1341_v31, %v1341_v31  ;;  %v3532_v33 = vpop.f32.mrb[13].mxu1 }
 0x482   : > { %3554 = vmatprep.mubr.msk.bf16.mxu1 %vm4048_vm1, %v4047_v3  ;;  %v1344_v34 = vpop.f32.mrb[14].mxu1 }
 0x483   : > { %v1476_v35 = vsel %vm1079_vm3, %v1352_v32, 0  ;;  %v1353_v36 = vpack.c.bf16 %v1344_v34, %v1344_v34  ;;  %v3533_v37 = vpop.f32.mrb[15].mxu1 }
 0x484   : > { %3547 = vmatpush3.bf16.msra.mxu0 %v1476_v35 }
 0x485   : > { %v1522_v38 = vsel %vm1079_vm3, %v1353_v36, 0  ;;  %3558 = vmatprep.subr.bf16.mxu0 %v4047_v3 }
 0x486   : > { %3553 = vmatpush3.bf16.msra.mxu1 %v1522_v38 }
 0x487   : > { %3566 = vmatprep.subr.bf16.mxu1 %v4047_v3 }
 0x552   : > { %v1394_v39 = vpop.f32.mrb[24].mxu0 }
 0x553   : > { %v1446_v40 = vmul.f32 0.17677669, %v1394_v39  ;;  %v3538_v41 = vpop.f32.mrb[25].mxu0 }
 0x554   : > { %v1397_v42 = vpop.f32.mrb[26].mxu0  ;;  %v1440_v43 = vpop.f32.mrb[16].mxu1 }
 0x555   : > { %v1447_v44 = vmul.f32 0.17677669, %v1440_v43  ;;  %v3539_v45 = vpop.f32.mrb[27].mxu0  ;;  %v3544_v46 = vpop.f32.mrb[17].mxu1  ;;  %v1448_v47 = vsel %vm1051_vm4, %v1446_v40, -inf }
 0x556   : > { %v1443_v48 = vpop.f32.mrb[18].mxu1  ;;  %1449 = vmax.xlane.f32.xlu0 %v1448_v47 }
 0x557   : > { %v3545_v49 = vpop.f32.mrb[19].mxu1  ;;  %v1451_v50 = vsel %vm1051_vm4, %v1447_v44, -inf }
 0x558   : > { %1452 = vmax.xlane.f32.xlu1 %v1451_v50 }
 0x5e3   : > { %v1450_v51 = vpop.xlane.xlu0 %1449 }
 0x5e4   : > { %v1454_v52 = vsub.f32 %v1446_v40, %v1450_v51 }
 0x5e5   : > { %v1453_v53 = vpop.xlane.xlu1 %1452 }
 0x5e6   : > { %v1456_v54 = vmul.f32 1.442695, %v1454_v52  ;;  %v1455_v55 = vsub.f32 %v1447_v44, %v1453_v53 }
 0x5e8   : > { %3844 = vpow2.f32 %v1456_v54  ;;  %v1458_v56 = vmul.f32 1.442695, %v1455_v55 }
 0x5ea   : > { %3846 = vpow2.f32 %v1458_v56 }
 0x5f2   : > { %v3845_v57 = vpop.eup %3844 }
 0x5f3   : > { %v1460_v58 = vsel %vm1051_vm4, %v3845_v57, 0.0 }
 0x5f4   : > { %v3847_v59 = vpop.eup %3846  ;;  %1461 = vadd.xlane.f32.xlu0 %v1460_v58 }
 0x5f5   : > { %v1463_v60 = vsel %vm1051_vm4, %v3847_v59, 0.0 }
 0x5f6   : > { %1464 = vadd.xlane.f32.xlu1 %v1463_v60 }
 0x681   : > { %v1462_v61 = vpop.xlane.xlu0 %1461 }
 0x682   : > { %3848 = vrcp.f32 %v1462_v61 }
 0x683   : > { %v1465_v62 = vpop.xlane.xlu1 %1464 }
 0x684   : > { %3850 = vrcp.f32 %v1465_v62 }
 0x68c   : > { %v3849_v63 = vpop.eup %3848 }
 0x68d   : > { %v1468_v0 = vmul.f32 %v3849_v63, %v3845_v57 }
 0x68e   : > { %v3851_v1 = vpop.eup %3850 }
 0x68f   : > { %v1469_v4 = vmul.f32 %v3851_v1, %v3847_v59  ;;  %v1470_v5 = vpack.c.bf16 %v1468_v0, %v1468_v0 }
 0x691   : > { %3549 = vmatmul.mubr.msk.bf16.vlgmr.msra.gmra.mrb[28].mxu0 %vm1051_vm4, %v1470_v5  ;;  %v1471_v9 = vpack.c.bf16 %v1469_v4, %v1469_v4 }
 0x692   : > { %3559 = vmatpush3.bf16.msra.mxu0 %v3809_v2  ;;  %3562 = vmatprep.mubr.msk.bf16.mxu0 %vm4048_vm1, %v4047_v3 }
 0x693   : > { %3555 = vmatmul.mubr.msk.bf16.vlgmr.msra.gmra.mrb[20].mxu1 %vm1051_vm4, %v1471_v9  ;;  %3560 = vmatprep.subr.bf16.mxu0 %v4047_v3 }
 0x694   : > { %3567 = vmatpush3.bf16.msra.mxu1 %v3806_v6  ;;  %3570 = vmatprep.mubr.msk.bf16.mxu1 %vm4048_vm1, %v4047_v3 }
 0x695   : > { %3568 = vmatprep.subr.bf16.mxu1 %v4047_v3 }
 0x696   : > { %3561 = vmatpush3.bf16.msra.mxu0 %v3811_v7 }
 0x697   : > { %3574 = vmatprep.subr.bf16.mxu0 %v4047_v3 }
 0x698   : > { %3569 = vmatpush3.bf16.msra.mxu1 %v3807_v10 }
 0x699   : > { %3582 = vmatprep.subr.bf16.mxu1 %v4047_v3 }
 0x69b   : > { %3571 = vmatmul.mubr.msk.bf16.vlgmr.msra.gmra.mrb[24].mxu1 %vm792_vm2, %v1169_v13 }
 0x69c   : > { %3583 = vmatpush3.bf16.msra.mxu1 %v3808_v11  ;;  %3586 = vmatprep.mubr.msk.bf16.mxu1 %vm4048_vm1, %v4047_v3 }
 0x69d   : > { %3584 = vmatprep.subr.bf16.mxu1 %v4047_v3 }
 0x6a0   : > { %3585 = vmatpush3.bf16.msra.mxu1 %v3810_v14 }
 0x6a1   : > { %3598 = vmatprep.subr.bf16.mxu1 %v4047_v3 }
 0x6a3   : > { %3587 = vmatmul.mubr.msk.bf16.vlgmr.msra.gmra.mrb[28].mxu1 %vm792_vm2, %v4399_v8 }
 0x6a4   : > { %3600 = vmatprep.mubr.msk.bf16.mxu1 %vm4048_vm1, %v4047_v3 }
 0x764   : > { %v1512_v12 = vpop.f32.mrb[28].mxu0 }
 0x765   : > { %v3550_v13 = vpop.f32.mrb[29].mxu0 }
 0x766   : > { %v1515_v15 = vpop.f32.mrb[30].mxu0  ;;  %v1558_v16 = vpop.f32.mrb[20].mxu1 }
 0x767   : > { %v1564_v18 = vpack.c.bf16 %v1558_v16, %v1512_v12  ;;  %v3551_v19 = vpop.f32.mrb[31].mxu0  ;;  %v3556_v20 = vpop.f32.mrb[21].mxu1 }
 0x768   : > { %v1561_v21 = vpop.f32.mrb[22].mxu1 }
 0x769   : > { %v3557_v22 = vpop.f32.mrb[23].mxu1  ;;  %3563 = vmatmul.mubr.msk.bf16.vlgmr.msra.gmra.mrb[32].mxu0 %vm792_vm2, %v1564_v18 }
 0x76a   : > { %3575 = vmatpush3.bf16.msra.mxu0 %v3812_v17  ;;  %3578 = vmatprep.mubr.msk.bf16.mxu0 %vm4048_vm1, %v4047_v3 }
 0x76b   : > { %3576 = vmatprep.subr.bf16.mxu0 %v4047_v3 }
 0x76e   : > { %v1675_v24 = vpop.f32.mrb[24].mxu1  ;;  %3577 = vmatpush3.bf16.msra.mxu0 %v3813_v23  ;;  %v3816_v23 = vld [vmem:[%s4380_s7 + $0x20] sm:$0xff]  }
 0x76f   : > { %v3572_v26 = vpop.f32.mrb[25].mxu1  ;;  %3590 = vmatprep.subr.bf16.mxu0 %v4047_v3 }
 0x770   : > { %v1678_v27 = vpop.f32.mrb[26].mxu1 }
 0x771   : > { %v3573_v28 = vpop.f32.mrb[27].mxu1  ;;  %3579 = vmatmul.mubr.msk.bf16.vlgmr.msra.gmra.mrb[36].mxu0 %vm792_vm2, %v4399_v8 }
 0x772   : > { %3591 = vmatpush3.bf16.msra.mxu0 %v3814_v25  ;;  %3594 = vmatprep.mubr.msk.bf16.mxu0 %vm4048_vm1, %v4047_v3  ;;  %v3820_v28 = vld [vmem:[%s4343_s29 + $0x30] sm:$0xff]  }
 0x773   : > { %3592 = vmatprep.subr.bf16.mxu0 %v4047_v3 }
 0x776   : > { %3593 = vmatpush3.bf16.msra.mxu0 %v3815_v29  ;;  %v1791_v30 = vpop.f32.mrb[28].mxu1  ;;  %v3821_v29 = vld [vmem:[%s4343_s29 + $0x38] sm:$0xff]   ;;  %s4839_s29 = sld [smem:[#allocation29_spill]] (!%p3352_p7) }
 0x777   : > { %v1858_v31 = vpack.c.bf16 %v1791_v30, %v1791_v30  ;;  %v3588_v32 = vpop.f32.mrb[29].mxu1  ;;  %3604 = vmatprep.subr.bf16.mxu0 %v4047_v3 }
 0x778   : > { %v1794_v33 = vpop.f32.mrb[30].mxu1 }
 0x779   : > { %v1866_v34 = vsel %vm792_vm2, %v1858_v31, 0  ;;  %v1859_v35 = vpack.c.bf16 %v1794_v33, %v1794_v33  ;;  %v3589_v36 = vpop.f32.mrb[31].mxu1  ;;  %3595 = vmatmul.mubr.msk.bf16.vlgmr.msra.gmra.mrb[40].mxu0 %vm792_vm2, %v4399_v8 }
 0x77a   : > { %3599 = vmatpush3.bf16.xpose.msra.mxu1 %v1866_v34  ;;  %3606 = vmatprep.mubr.msk.bf16.mxu0 %vm4048_vm1, %v4047_v3  ;;  %v3818_v34 = vld [vmem:[%s4318_s13 + $0x30] sm:$0xff]  }
 0x77b   : > { %3610 = vmatprep.subr.bf16.mxu1 %v4047_v3  ;;  %v1912_v37 = vsel %vm792_vm2, %v1859_v35, 0 }
 0x77f   : > { %3605 = vmatpush3.bf16.xpose.msra.mxu0 %v1912_v37 }
 0x780   : > { %3616 = vmatprep.subr.bf16.mxu0 %v4047_v3 }
 0x83c   : > { %v1619_v38 = vpop.f32.mrb[32].mxu0 }
 0x83d   : > { %v4544_v39 = vadd.f32 %v1675_v24, %v1619_v38  ;;  %v3564_v40 = vpop.f32.mrb[33].mxu0 }
 0x83e   : > { %v1622_v41 = vpop.f32.mrb[34].mxu0 }
 0x83f   : > { %v4546_v42 = vadd.f32 %v1678_v27, %v1622_v41  ;;  %v3565_v43 = vpop.f32.mrb[35].mxu0  ;;  %v3817_v27 = vld [vmem:[%s4380_s7 + $0x28] sm:$0xff]   ;;  %v3819_v41 = vld [vmem:[%s4318_s13 + $0x38] sm:$0xff]  }
 0x840   : > { %v3822_v43 = vld [vmem:[%s4325_s26 + $0x30] sm:$0xff]  }
 0x844   : > { %v1733_v44 = vpop.f32.mrb[36].mxu0 }
 0x845   : > { %v1856_v45 = vpack.c.bf16 %v1733_v44, %v1733_v44  ;;  %v3580_v46 = vpop.f32.mrb[37].mxu0  ;;  %v3823_v44 = vld [vmem:[%s4325_s26 + $0x38] sm:$0xff]   ;;  %s4832_s26 = scalar_lea.vmem %s4766_s6, %s4333_s0 }
 0x846   : > { %v1736_v47 = vpop.f32.mrb[38].mxu0 }
 0x847   : > { %v1857_v48 = vpack.c.bf16 %v1736_v47, %v1736_v47  ;;  %v3581_v49 = vpop.f32.mrb[39].mxu0  ;;  %3601 = vmatmul.mubr.msk.bf16.vlgmr.msra.gmra.mrb[32].mxu1 %vm792_vm2, %v1856_v45 }
 0x848   : > { %3612 = vmatprep.mubr.msk.bf16.mxu1 %vm4048_vm1, %v4047_v3 }
 0x849   : > { %3607 = vmatmul.mubr.msk.bf16.vlgmr.msra.gmra.mrb[44].mxu0 %vm792_vm2, %v1857_v48 }
 0x84a   : > { %3618 = vmatprep.mubr.msk.bf16.mxu0 %vm4048_vm1, %v4047_v3 }
 0x84c   : > { %v1849_v50 = vpop.f32.mrb[40].mxu0 }
 0x84d   : > { %v1860_v51 = vpack.c.bf16 %v1849_v50, %v1849_v50  ;;  %v3596_v52 = vpop.f32.mrb[41].mxu0 }
 0x84e   : > { %v1852_v53 = vpop.f32.mrb[42].mxu0 }
 0x84f   : > { %v1984_v54 = vsel %vm1079_vm3, %v1860_v51, 0  ;;  %v1861_v55 = vpack.c.bf16 %v1852_v53, %v1852_v53  ;;  %v3597_v56 = vpop.f32.mrb[43].mxu0 }
 0x850   : > { %3611 = vmatpush3.bf16.msra.mxu1 %v1984_v54 }
 0x851   : > { %v2030_v57 = vsel %vm1079_vm3, %v1861_v55, 0  ;;  %3622 = vmatprep.subr.bf16.mxu1 %v4047_v3 }
 0x852   : > { %3617 = vmatpush3.bf16.msra.mxu0 %v2030_v57 }
 0x853   : > { %3630 = vmatprep.subr.bf16.mxu0 %v4047_v3 }
 0x91a   : > { %v1902_v58 = vpop.f32.mrb[32].mxu1 }
 0x91b   : > { %v1954_v59 = vmul.f32 0.17677669, %v1902_v58  ;;  %v3602_v60 = vpop.f32.mrb[33].mxu1 }
 0x91c   : > { %v1905_v61 = vpop.f32.mrb[34].mxu1  ;;  %v1948_v62 = vpop.f32.mrb[44].mxu0 }
 0x91d   : > { %v1955_v63 = vmul.f32 0.17677669, %v1948_v62  ;;  %v3603_v0 = vpop.f32.mrb[35].mxu1  ;;  %v3608_v1 = vpop.f32.mrb[45].mxu0  ;;  %v1956_v2 = vsel %vm1051_vm4, %v1954_v59, -inf }
 0x91e   : > { %1957 = vmax.xlane.f32.xlu0 %v1956_v2  ;;  %v1951_v4 = vpop.f32.mrb[46].mxu0 }
 0x91f   : > { %v3609_v5 = vpop.f32.mrb[47].mxu0  ;;  %v1959_v6 = vsel %vm1051_vm4, %v1955_v63, -inf }
 0x920   : > { %1960 = vmax.xlane.f32.xlu1 %v1959_v6 }
 0x9ab   : > { %v1958_v9 = vpop.xlane.xlu0 %1957 }
 0x9ac   : > { %v1962_v10 = vsub.f32 %v1954_v59, %v1958_v9 }
 0x9ad   : > { %v1961_v11 = vpop.xlane.xlu1 %1960 }
 0x9ae   : > { %v1964_v14 = vmul.f32 1.442695, %v1962_v10  ;;  %v1963_v7 = vsub.f32 %v1955_v63, %v1961_v11 }
 0x9b0   : > { %3852 = vpow2.f32 %v1964_v14  ;;  %v1966_v12 = vmul.f32 1.442695, %v1963_v7 }
 0x9b2   : > { %3854 = vpow2.f32 %v1966_v12 }
 0x9ba   : > { %v3853_v13 = vpop.eup %3852 }
 0x9bb   : > { %v1968_v15 = vsel %vm1051_vm4, %v3853_v13, 0.0 }
 0x9bc   : > { %v3855_v16 = vpop.eup %3854  ;;  %1969 = vadd.xlane.f32.xlu0 %v1968_v15 }
 0x9bd   : > { %v1971_v17 = vsel %vm1051_vm4, %v3855_v16, 0.0 }
 0x9be   : > { %1972 = vadd.xlane.f32.xlu1 %v1971_v17 }
 0xa49   : > { %v1970_v18 = vpop.xlane.xlu0 %1969 }
 0xa4a   : > { %3856 = vrcp.f32 %v1970_v18 }
 0xa4b   : > { %v1973_v19 = vpop.xlane.xlu1 %1972 }
 0xa4c   : > { %3858 = vrcp.f32 %v1973_v19 }
 0xa54   : > { %v3857_v20 = vpop.eup %3856 }
 0xa55   : > { %v1976_v21 = vmul.f32 %v3857_v20, %v3853_v13 }
 0xa56   : > { %v3859_v22 = vpop.eup %3858 }
 0xa57   : > { %v1977_v24 = vmul.f32 %v3859_v22, %v3855_v16  ;;  %v1978_v25 = vpack.c.bf16 %v1976_v21, %v1976_v21 }
 0xa59   : > { %3613 = vmatmul.mubr.msk.bf16.vlgmr.msra.gmra.mrb[36].mxu1 %vm1051_vm4, %v1978_v25  ;;  %v1979_v26 = vpack.c.bf16 %v1977_v24, %v1977_v24 }
 0xa5a   : > { %3623 = vmatpush3.bf16.msra.mxu1 %v3816_v23  ;;  %3626 = vmatprep.mubr.msk.bf16.mxu1 %vm4048_vm1, %v4047_v3 }
 0xa5b   : > { %3619 = vmatmul.mubr.msk.bf16.vlgmr.msra.gmra.mrb[48].mxu0 %vm1051_vm4, %v1979_v26  ;;  %3624 = vmatprep.subr.bf16.mxu1 %v4047_v3 }
 0xa5c   : > { %3634 = vmatprep.mubr.msk.bf16.mxu0 %vm4048_vm1, %v4047_v3  ;;  %3631 = vmatpush3.bf16.msra.mxu0 %v3820_v28 }
 0xa5d   : > { %3632 = vmatprep.subr.bf16.mxu0 %v4047_v3 }
 0xa5e   : > { %3625 = vmatpush3.bf16.msra.mxu1 %v3817_v27 }
 0xa5f   : > { %3638 = vmatprep.subr.bf16.mxu1 %v4047_v3 }
 0xa60   : > { %3633 = vmatpush3.bf16.msra.mxu0 %v3821_v29 }
 0xa61   : > { %3646 = vmatprep.subr.bf16.mxu0 %v4047_v3 }
 0xa63   : > { %3635 = vmatmul.mubr.msk.bf16.vlgmr.msra.gmra.mrb[52].mxu0 %vm792_vm2, %v4399_v8 }
 0xa64   : > { %3650 = vmatprep.mubr.msk.bf16.mxu0 %vm4048_vm1, %v4047_v3  ;;  %3647 = vmatpush3.bf16.msra.mxu0 %v3822_v43 }
 0xa65   : > { %3648 = vmatprep.subr.bf16.mxu0 %v4047_v3 }
 0xa68   : > { %3649 = vmatpush3.bf16.msra.mxu0 %v3823_v44 }
 0xa69   : > { %3660 = vmatprep.subr.bf16.mxu0 %v4047_v3 }
 0xa6b   : > { %3651 = vmatmul.mubr.msk.bf16.vlgmr.msra.gmra.mrb[56].mxu0 %vm792_vm2, %v4399_v8 }
 0xa6c   : > { %3662 = vmatprep.mubr.msk.bf16.mxu0 %vm4048_vm1, %v4047_v3 }
 0xb2c   : > { %v2020_v30 = vpop.f32.mrb[36].mxu1 }
 0xb2d   : > { %v3614_v31 = vpop.f32.mrb[37].mxu1 }
 0xb2e   : > { %v2023_v32 = vpop.f32.mrb[38].mxu1  ;;  %v2066_v33 = vpop.f32.mrb[48].mxu0 }
 0xb2f   : > { %v2072_v35 = vpack.c.bf16 %v2066_v33, %v2020_v30  ;;  %v3615_v36 = vpop.f32.mrb[39].mxu1  ;;  %v3620_v37 = vpop.f32.mrb[49].mxu0 }
 0xb30   : > { %v2069_v38 = vpop.f32.mrb[50].mxu0 }
 0xb31   : > { %v3621_v40 = vpop.f32.mrb[51].mxu0  ;;  %3627 = vmatmul.mubr.msk.bf16.vlgmr.msra.gmra.mrb[40].mxu1 %vm792_vm2, %v2072_v35  ;;  %v3824_v35 = vld [vmem:[%s4380_s7 + $0x30] sm:$0xff]  }
 0xb32   : > { %3639 = vmatpush3.bf16.msra.mxu1 %v3818_v34  ;;  %3642 = vmatprep.mubr.msk.bf16.mxu1 %vm4048_vm1, %v4047_v3  ;;  %v3825_v40 = vld [vmem:[%s4380_s7 + $0x38] sm:$0xff]  }
 0xb33   : > { %3640 = vmatprep.subr.bf16.mxu1 %v4047_v3 }
 0xb36   : > { %3641 = vmatpush3.bf16.msra.mxu1 %v3819_v41  ;;  %v2187_v45 = vpop.f32.mrb[52].mxu0 }
 0xb37   : > { %3654 = vmatprep.subr.bf16.mxu1 %v4047_v3  ;;  %v3636_v46 = vpop.f32.mrb[53].mxu0 }
 0xb38   : > { %v2190_v47 = vpop.f32.mrb[54].mxu0 }
 0xb39   : > { %3643 = vmatmul.mubr.msk.bf16.vlgmr.msra.gmra.mrb[44].mxu1 %vm792_vm2, %v4399_v8  ;;  %v3637_v48 = vpop.f32.mrb[55].mxu0 }
 0xb3a   : > { %3656 = vmatprep.mubr.msk.bf16.mxu1 %vm4048_vm1, %v4047_v3 }
 0xb3e   : > { %v2303_v62 = vpop.f32.mrb[56].mxu0 }
 0xb3f   : > { %v2314_v63 = vpack.c.bf16 %v2303_v62, %v2303_v62  ;;  %v3652_v0 = vpop.f32.mrb[57].mxu0  ;;  %v3877_v62 = vld [vmem:[#allocation2 + $0x8] sm:$0xff] }
 0xb40   : > { %v2306_v1 = vpop.f32.mrb[58].mxu0 }
 0xb41   : > { %v2438_v2 = vsel %vm1079_vm3, %v2314_v63, 0  ;;  %v2315_v4 = vpack.c.bf16 %v2306_v1, %v2306_v1  ;;  %v3653_v5 = vpop.f32.mrb[59].mxu0 }
 0xb43   : > { %v2484_v6 = vsel %vm1079_vm3, %v2315_v4, 0 }
 0xc04   : > { %v2127_v49 = vpop.f32.mrb[40].mxu1 }
 0xc05   : > { %v4600_v50 = vadd.f32 %v2127_v49, %v4544_v39  ;;  %v3628_v51 = vpop.f32.mrb[41].mxu1  ;;  %v2310_v39 = vpack.c.bf16 %v2187_v45, %v2187_v45 }
 0xc06   : > { %v2130_v52 = vpop.f32.mrb[42].mxu1 }
 0xc07   : > { %v4603_v53 = vadd.f32 %v2130_v52, %v4546_v42  ;;  %v3629_v54 = vpop.f32.mrb[43].mxu1  ;;  %v2311_v42 = vpack.c.bf16 %v2190_v47, %v2190_v47 }
 0xc08   : > { %v3334_v54 = vld [vmem:[%s4831_s28] ss:$0 sm:$0xff] }
 0xc0c   : > { %v2245_v55 = vpop.f32.mrb[44].mxu1 }
 0xc0d   : > { %v2312_v56 = vpack.c.bf16 %v2245_v55, %v2245_v55  ;;  %v3644_v8 = vpop.f32.mrb[45].mxu1 }
 0xc0e   : > { %v2248_v57 = vpop.f32.mrb[46].mxu1 }
 0xc0f   : > { %v2320_v58 = vsel %vm792_vm2, %v2312_v56, 0  ;;  %v2313_v59 = vpack.c.bf16 %v2248_v57, %v2248_v57  ;;  %v3645_v60 = vpop.f32.mrb[47].mxu1 }
 0xc10   : > { %3655 = vmatpush3.bf16.xpose.msra.mxu1 %v2320_v58 }
 0xc11   : > { %v2366_v61 = vsel %vm792_vm2, %v2313_v59, 0  ;;  %3666 = vmatprep.subr.bf16.mxu1 %v4047_v3 }
 0xc12   : > { %3661 = vmatpush3.bf16.xpose.msra.mxu0 %v2366_v61  ;;  %v3876_v61 = vld [vmem:[#allocation2] sm:$0xff] }
 0xc13   : > { %3672 = vmatprep.subr.bf16.mxu0 %v4047_v3 }
 0xc17   : > { %3657 = vmatmul.mubr.msk.bf16.vlgmr.msra.gmra.mrb[48].mxu1 %vm792_vm2, %v2310_v39 }
 0xc18   : > { %3668 = vmatprep.mubr.msk.bf16.mxu1 %vm4048_vm1, %v4047_v3  ;;  %3667 = vmatpush3.bf16.msra.mxu1 %v2438_v2 }
 0xc19   : > { %3663 = vmatmul.mubr.msk.bf16.vlgmr.msra.gmra.mrb[60].mxu0 %vm792_vm2, %v2311_v42  ;;  %3678 = vmatprep.subr.bf16.mxu1 %v4047_v3 }
 0xc1a   : > { %3674 = vmatprep.mubr.msk.bf16.mxu0 %vm4048_vm1, %v4047_v3  ;;  %3673 = vmatpush3.bf16.msra.mxu0 %v2484_v6 }
 0xc1b   : > { %3686 = vmatprep.subr.bf16.mxu0 %v4047_v3 }
 0xcea   : > { %v2356_v9 = vpop.f32.mrb[48].mxu1 }
 0xceb   : > { %v2408_v10 = vmul.f32 0.17677669, %v2356_v9  ;;  %v3658_v11 = vpop.f32.mrb[49].mxu1 }
 0xcec   : > { %v2359_v14 = vpop.f32.mrb[50].mxu1  ;;  %v2402_v7 = vpop.f32.mrb[60].mxu0 }
 0xced   : > { %v2409_v12 = vmul.f32 0.17677669, %v2402_v7  ;;  %v3659_v13 = vpop.f32.mrb[51].mxu1  ;;  %v3664_v15 = vpop.f32.mrb[61].mxu0  ;;  %v2410_v16 = vsel %vm1051_vm4, %v2408_v10, -inf  ;;  %v3826_v14 = vld [vmem:[%s4357_s2] sm:$0xff]  }
 0xcee   : > { %2411 = vmax.xlane.f32.xlu0 %v2410_v16  ;;  %v2405_v17 = vpop.f32.mrb[62].mxu0  ;;  %v3827_v7 = vld [vmem:[%s4357_s2 + $0x8] sm:$0xff]   ;;  %v3830_v15 = vld [vmem:[%s4366_s4 + $0x10] sm:$0xff]   ;;  %v3831_v16 = vld [vmem:[%s4366_s4 + $0x18] sm:$0xff]  }
 0xcef   : > { %v3665_v18 = vpop.f32.mrb[63].mxu0  ;;  %v2413_v19 = vsel %vm1051_vm4, %v2409_v12, -inf  ;;  %v3829_v13 = vld [vmem:[%s4366_s4 + $0x8] sm:$0xff]   ;;  %v3832_v17 = vld [vmem:[%s4366_s4 + $0x20] sm:$0xff]  }
 0xcf0   : > { %2414 = vmax.xlane.f32.xlu1 %v2413_v19  ;;  %v3833_v18 = vld [vmem:[%s4366_s4 + $0x28] sm:$0xff]  }
 0xd7b   : > { %v2412_v20 = vpop.xlane.xlu0 %2411 }
 0xd7c   : > { %v2416_v21 = vsub.f32 %v2408_v10, %v2412_v20 }
 0xd7d   : > { %v2415_v22 = vpop.xlane.xlu1 %2414 }
 0xd7e   : > { %v2418_v23 = vmul.f32 1.442695, %v2416_v21  ;;  %v2417_v24 = vsub.f32 %v2409_v12, %v2415_v22  ;;  %v3828_v12 = vld [vmem:[%s4366_s4] sm:$0xff]  }
 0xd80   : > { %3860 = vpow2.f32 %v2418_v23  ;;  %v2420_v25 = vmul.f32 1.442695, %v2417_v24 }
 0xd82   : > { %3862 = vpow2.f32 %v2420_v25 }
 0xd8a   : > { %v3861_v26 = vpop.eup %3860 }
 0xd8b   : > { %v2422_v27 = vsel %vm1051_vm4, %v3861_v26, 0.0 }
 0xd8c   : > { %v3863_v28 = vpop.eup %3862  ;;  %2423 = vadd.xlane.f32.xlu0 %v2422_v27 }
 0xd8d   : > { %v2425_v29 = vsel %vm1051_vm4, %v3863_v28, 0.0 }
 0xd8e   : > { %2426 = vadd.xlane.f32.xlu1 %v2425_v29 }
 0xe19   : > { %v2424_v30 = vpop.xlane.xlu0 %2423 }
 0xe1a   : > { %3864 = vrcp.f32 %v2424_v30 }
 0xe1b   : > { %v2427_v31 = vpop.xlane.xlu1 %2426 }
 0xe1c   : > { %3866 = vrcp.f32 %v2427_v31  ;;  %v3336_v31 = vld [vmem:[%s4834_s10] ss:$0 sm:$0xff] }
 0xe24   : > { %v3865_v32 = vpop.eup %3864 }
 0xe25   : > { %v2430_v33 = vmul.f32 %v3865_v32, %v3861_v26  ;;  %v3335_v26 = vld [vmem:[%s4832_s26] ss:$0 sm:$0xff] }
 0xe26   : > { %v3867_v34 = vpop.eup %3866 }
 0xe27   : > { %v2431_v36 = vmul.f32 %v3867_v34, %v3863_v28  ;;  %v2432_v37 = vpack.c.bf16 %v2430_v33, %v2430_v33 }
 0xe29   : > { %3669 = vmatmul.mubr.msk.bf16.vlgmr.msra.gmra.mrb[52].mxu1 %vm1051_vm4, %v2432_v37  ;;  %v2433_v38 = vpack.c.bf16 %v2431_v36, %v2431_v36  ;;  %v3834_v36 = vld [vmem:[%s4366_s4 + $0x30] sm:$0xff]   ;;  %v3835_v37 = vld [vmem:[%s4366_s4 + $0x38] sm:$0xff]  }
 0xe2a   : > { %3679 = vmatpush3.bf16.msra.mxu1 %v3824_v35  ;;  %3682 = vmatprep.mubr.msk.bf16.mxu1 %vm4048_vm1, %v4047_v3 }
 0xe2b   : > { %3675 = vmatmul.mubr.msk.bf16.vlgmr.msra.gmra.mrb[64].mxu0 %vm1051_vm4, %v2433_v38  ;;  %3680 = vmatprep.subr.bf16.mxu1 %v4047_v3  ;;  %v3337_v38 = vld [vmem:[%s748_s20] ss:$0 sm:$0xff] }
 0xe2c   : > { %3690 = vmatprep.mubr.msk.bf16.mxu0 %vm4048_vm1, %v4047_v3  ;;  %3687 = vmatpush3.bf16.msra.mxu0 %v3826_v14 }
 0xe2d   : > { %3688 = vmatprep.subr.bf16.mxu0 %v4047_v3 }
 0xe2e   : > { %3681 = vmatpush3.bf16.msra.mxu1 %v3825_v40 }
 0xe2f   : > { %3694 = vmatprep.subr.bf16.mxu1 %v4047_v3 }
 0xe30   : > { %3689 = vmatpush3.bf16.msra.mxu0 %v3827_v7  ;;  %v3350_v7 = vld [vmem:[%s759_s22] ss:$0 sm:$0xff] }
 0xefc   : > { %v2474_v41 = vpop.f32.mrb[52].mxu1 }
 0xefd   : > { %v3670_v43 = vpop.f32.mrb[53].mxu1 }
 0xefe   : > { %v2477_v44 = vpop.f32.mrb[54].mxu1  ;;  %v2520_v45 = vpop.f32.mrb[64].mxu0 }
 0xeff   : > { %v2526_v46 = vpack.c.bf16 %v2520_v45, %v2474_v41  ;;  %v3671_v47 = vpop.f32.mrb[55].mxu1  ;;  %v3676_v48 = vpop.f32.mrb[65].mxu0 }
 0xf00   : > { %v2523_v49 = vpop.f32.mrb[66].mxu0 }
 0xf01   : > { %v3677_v51 = vpop.f32.mrb[67].mxu0  ;;  %3683 = vmatmul.mubr.msk.bf16.vlgmr.msra.gmra.mrb[56].mxu1 %vm792_vm2, %v2526_v46 }
 0xf02   : > { %3710 = vmatprep.mubr.msk.bf16.mxu1 %vm4048_vm1, %v4047_v3  ;;  %3695 = vmatpush3.bf16.msra.mxu1 %v3828_v12 }
 0xf03   : > { %3696 = vmatprep.subr.bf16.mxu1 %v4047_v3 }
 0xf06   : > { %3697 = vmatpush3.bf16.msra.mxu1 %v3829_v13 }
 0xf07   : > { %3698 = vmatprep.subr.bf16.mxu1 %v4047_v3 }
 0xf0a   : > { %3699 = vmatpush3.bf16.msra.mxu1 %v3830_v15  ;;  %v3351_v15 = vld [vmem:[%s762_s8] ss:$0 sm:$0xff] }
 0xf0b   : > { %3700 = vmatprep.subr.bf16.mxu1 %v4047_v3 }
 0xf0e   : > { %3701 = vmatpush3.bf16.msra.mxu1 %v3831_v16 }
 0xf0f   : > { %3702 = vmatprep.subr.bf16.mxu1 %v4047_v3 }
 0xf12   : > { %3703 = vmatpush3.bf16.msra.mxu1 %v3832_v17 }
 0xf13   : > { %3704 = vmatprep.subr.bf16.mxu1 %v4047_v3 }
 0xf16   : > { %3705 = vmatpush3.bf16.msra.mxu1 %v3833_v18 }
 0xf17   : > { %3706 = vmatprep.subr.bf16.mxu1 %v4047_v3 }
 0xf1a   : > { %3707 = vmatpush3.bf16.msra.mxu1 %v3834_v36 }
 0xf1b   : > { %3708 = vmatprep.subr.bf16.mxu1 %v4047_v3  ;;  %v3341_v3 = vld [vmem:[%s756_s16] ss:$0 sm:$0xff] }
 0xf1e   : > { %3709 = vmatpush3.bf16.msra.mxu1 %v3835_v37 }
 0xfd4   : > { %v2581_v52 = vpop.f32.mrb[56].mxu1 }
 0xfd5   : > { %v2588_v55 = vadd.f32 %v2581_v52, %v4600_v50  ;;  %v3684_v56 = vpop.f32.mrb[57].mxu1 }
 0xfd6   : > { %v2584_v8 = vpop.f32.mrb[58].mxu1 }
 0xfd7   : > { %v2597_v57 = vadd.f32 %v3334_v54, %v2588_v55  ;;  %v2589_v58 = vadd.f32 %v2584_v8, %v4603_v53  ;;  %v3685_v59 = vpop.f32.mrb[59].mxu1 }
 0xfd9   : > { %v2598_v60 = vadd.f32 %v3334_v54, %v2589_v58  ;;  %v2599_v39 = vadd.f32 %v3876_v61, %v2597_v57 }
 0xfdb   : > { %v2603_v42 = vsel %vm792_vm2, %v2599_v39, 0.0  ;;  %v2600_v63 = vadd.f32 %v3877_v62, %v2598_v60 }
 0xfdc   : > { %2604 = vadd.xlane.f32.xlu0 %v2603_v42 }
 0xfdd   : > { %v2606_v0 = vsel %vm792_vm2, %v2600_v63, 0.0 }
 0xfde   : > { %2607 = vadd.xlane.f32.xlu1 %v2606_v0 }
0x1069   : > { %v2605_v50 = vpop.xlane.xlu0 %2604 }
0x106a   : > { %v2610_v1 = vmul.f32 0.03125, %v2605_v50 }
0x106b   : > { %v2608_v2 = vpop.xlane.xlu1 %2607 }
0x106c   : > { %v2612_v4 = vsub.f32 %v2599_v39, %v2610_v1  ;;  %v2611_v53 = vmul.f32 0.03125, %v2608_v2 }
0x106e   : > { %v2613_v5 = vsub.f32 %v2600_v63, %v2611_v53  ;;  %v2614_v6 = vmul.f32 %v2612_v4, %v2612_v4 }
0x1070   : > { %v2616_v9 = vsel %vm792_vm2, %v2614_v6, 0.0  ;;  %v2615_v10 = vmul.f32 %v2613_v5, %v2613_v5 }
0x1071   : > { %2617 = vadd.xlane.f32.xlu0 %v2616_v9 }
0x1072   : > { %v2619_v11 = vsel %vm792_vm2, %v2615_v10, 0.0 }
0x1073   : > { %2620 = vadd.xlane.f32.xlu1 %v2619_v11 }
0x10fe   : > { %v2618_v19 = vpop.xlane.xlu0 %2617 }
0x10ff   : > { %v2622_v20 = vmul.f32 0.03125, %v2618_v19 }
0x1100   : > { %v2621_v21 = vpop.xlane.xlu1 %2620 }
0x1101   : > { %v2624_v22 = vadd.f32 1e-05, %v2622_v20  ;;  %v2623_v23 = vmul.f32 0.03125, %v2621_v21  ;;  %v2898_v21 = vld [vmem:[%s4838_s17] sm:$0xff] (!%p3352_p7) }
0x1103   : > { %3868 = vrsqrt.f32 %v2624_v22  ;;  %v2625_v24 = vadd.f32 1e-05, %v2623_v23  ;;  %v2899_v22 = vld [vmem:[%s4838_s17 + $0x8] sm:$0xff] (!%p3352_p7)  ;;  %v2900_v23 = vld [vmem:[%s4838_s17 + $0x10] sm:$0xff] (!%p3352_p7) }
0x1105   : > { %3870 = vrsqrt.f32 %v2625_v24  ;;  %v4049_v24 = vmov (!%p3352_p7), 0.0|0.0  }
0x1106   : > { %3725 = vmatprep.subr.bf16.mxu0 (!%p3352_p7), %v4049_v24 }
0x110d   : > { %v3869_v25 = vpop.eup %3868 }
0x110e   : > { %v2628_v27 = vmul.f32 %v3869_v25, %v2612_v4  ;;  %v3726_v25 = vpack.c.bf16 (!%p3352_p7), %v2899_v22, %v2898_v21 }
0x110f   : > { %v3871_v28 = vpop.eup %3870 }
0x1110   : > { %v2636_v29 = vmul.f32 %v3335_v26, %v2628_v27  ;;  %v2629_v30 = vmul.f32 %v3871_v28, %v2613_v5  ;;  %v4051_v27 = vmov (!%p3352_p7), 0.0  }
0x1112   : > { %v2637_v32 = vmul.f32 %v3335_v26, %v2629_v30  ;;  %v2644_v33 = vadd.f32 %v3336_v31, %v2636_v29  ;;  %v2901_v26 = vld [vmem:[%s4838_s17 + $0x18] sm:$0xff] (!%p3352_p7) }
0x1114   : > { %v2645_v34 = vadd.f32 %v3336_v31, %v2637_v32  ;;  %v3729_v32 = vpack.c.bf16 (!%p3352_p7), %v2901_v26, %v2900_v23 }
0x1116   : > { %v2646_v35 = vpack.c.bf16 %v2645_v34, %v2644_v33 }
0x1118   : > { %3691 = vmatmul.mubr.msk.bf16.vlgmr.msra.gmra.mrb[68].mxu0 %vm792_vm2, %v2646_v35 }
0x1119   : > { %3722 = vmatprep.mubr.msk.f32.mxu0 (!%p3352_p7), %vm4050_vm5, %v4051_v27  ;;  %3727 = vmatpush3.bf16.msra.mxu0 (!%p3352_p7), %v3726_v25 }
0x111a   : > { %3728 = vmatprep.subr.bf16.mxu0 (!%p3352_p7), %v4049_v24 }
0x111d   : > { %3730 = vmatpush3.bf16.msra.mxu0 (!%p3352_p7), %v3729_v32 }
0x11eb   : > { %v2707_v40 = vpop.f32.mrb[68].mxu0 }
0x11ec   : > { %v2708_v41 = vadd.f32 %v3337_v38, %v2707_v40  ;;  %v3692_v43 = vpop.f32.mrb[69].mxu0 }
0x11ed   : > { %v2710_v44 = vpop.f32.mrb[70].mxu0 }
0x11ee   : > { %v2711_v45 = vadd.f32 %v3337_v38, %v2710_v44  ;;  %v3693_v46 = vpop.f32.mrb[71].mxu0  ;;  %v2714_v47 = vmax.f32 %v2708_v41, 0.0 }
0x11f0   : > { %v2715_v48 = vmax.f32 %v2711_v45, 0.0 }
0x11f2   : > { %v2716_v49 = vpack.c.bf16 %v2715_v48, %v2714_v47  ;;  %v3353_v48 = vld [vmem:[%s4839_s29] ss:$0 sm:$0xff] (!%p3352_p7) }
0x11f4   : > { %3711 = vmatmul.mubr.bf16.vlgmr.msra.gmra.mrb[60].mxu1 %v2716_v49 }
0x12c7   : > { %v2822_v51 = vpop.f32.mrb[60].mxu1 }
0x12c8   : > { %v2823_v52 = vadd.f32 %v3341_v3, %v2822_v51  ;;  %v3712_v54 = vpop.f32.mrb[61].mxu1 }
0x12c9   : > { %v2825_v55 = vpop.f32.mrb[62].mxu1 }
0x12ca   : > { %v2826_v56 = vadd.f32 %v3341_v3, %v2825_v55  ;;  %v3713_v8 = vpop.f32.mrb[63].mxu1  ;;  %v2829_v57 = vadd.f32 %v2823_v52, %v2644_v33 }
0x12cc   : > { %v2833_v58 = vsel %vm792_vm2, %v2829_v57, 0.0  ;;  %v2830_v59 = vadd.f32 %v2826_v56, %v2645_v34 }
0x12cd   : > { %2834 = vadd.xlane.f32.xlu0 %v2833_v58 }
0x12ce   : > { %v2836_v60 = vsel %vm792_vm2, %v2830_v59, 0.0 }
0x12cf   : > { %2837 = vadd.xlane.f32.xlu1 %v2836_v60 }
0x135a   : > { %v2835_v61 = vpop.xlane.xlu0 %2834 }
0x135b   : > { %v2839_v39 = vmul.f32 0.03125, %v2835_v61 }
0x135c   : > { %v2838_v42 = vpop.xlane.xlu1 %2837 }
0x135d   : > { %v2841_v62 = vsub.f32 %v2829_v57, %v2839_v39  ;;  %v2840_v63 = vmul.f32 0.03125, %v2838_v42 }
0x135f   : > { %v2842_v0 = vsub.f32 %v2830_v59, %v2840_v63  ;;  %v2843_v50 = vmul.f32 %v2841_v62, %v2841_v62 }
0x1361   : > { %v2845_v1 = vsel %vm792_vm2, %v2843_v50, 0.0  ;;  %v2844_v2 = vmul.f32 %v2842_v0, %v2842_v0 }
0x1362   : > { %2846 = vadd.xlane.f32.xlu0 %v2845_v1 }
0x1363   : > { %v2848_v4 = vsel %vm792_vm2, %v2844_v2, 0.0 }
0x1364   : > { %2849 = vadd.xlane.f32.xlu1 %v2848_v4 }
0x13ef   : > { %v2847_v53 = vpop.xlane.xlu0 %2846 }
0x13f0   : > { %v2851_v5 = vmul.f32 0.03125, %v2847_v53 }
0x13f1   : > { %v2850_v6 = vpop.xlane.xlu1 %2849 }
0x13f2   : > { %v2853_v9 = vadd.f32 1e-05, %v2851_v5  ;;  %v2852_v10 = vmul.f32 0.03125, %v2850_v6 }
0x13f4   : > { %3872 = vrsqrt.f32 %v2853_v9  ;;  %v2854_v11 = vadd.f32 1e-05, %v2852_v10 }
0x13f6   : > { %3874 = vrsqrt.f32 %v2854_v11 }
0x13fe   : > { %v3873_v14 = vpop.eup %3872 }
0x13ff   : > { %v2857_v12 = vmul.f32 %v3873_v14, %v2841_v62 }
0x1400   : > { %v3875_v13 = vpop.eup %3874 }
0x1401   : > { %v2865_v16 = vmul.f32 %v3350_v7, %v2857_v12  ;;  %v2858_v17 = vmul.f32 %v3875_v13, %v2842_v0  ;;  %2880 = sbr.rel (%p3352_p7) target bundleno = 5676 (0x162c), region = 104 }
0x1403   : > { %v2873_v18 = vadd.f32 %v3351_v15, %v2865_v16  ;;  %v2866_v19 = vmul.f32 %v3350_v7, %v2858_v17 }
0x1405   : > { %2875 = vst.msk [vmem:[#allocation2] sm:$0xff] %vm792_vm2, %v2873_v18  ;;  %v2874_v20 = vadd.f32 %v3351_v15, %v2866_v19  ;;  %v2881_v28 = vsel (!%p3352_p7), %vm792_vm2, %v2873_v18, 0.0 }
0x1406   : > { %v2882_v30 = vrot.slane (!%p3352_p7), %v2881_v28, 4 }
0x1407   : > { %2876 = vst.msk [vmem:[#allocation2 + $0x8] sm:$0xff] %vm792_vm2, %v2874_v20  ;;  %v2888_v29 = vsel (!%p3352_p7), %vm792_vm2, %v2874_v20, 0.0 }
0x1408   : > { %v2889_v31 = vrot.slane %v2888_v29, 4  ;;  %v2883_v33 = vadd.f32 %v2882_v30, %v2881_v28 }
0x140a   : > { %v2890_v34 = vadd.f32 %v2889_v31, %v2888_v29  ;;  %v2884_v35 = vrot.slane %v2883_v33, 2 }
0x140c   : > { %v2891_v36 = vrot.slane %v2890_v34, 2  ;;  %v2885_v37 = vadd.f32 %v2884_v35, %v2883_v33 }
0x140e   : > { %v2892_v38 = vadd.f32 %v2891_v36, %v2890_v34  ;;  %v2886_v40 = vrot.slane %v2885_v37, 1 }
0x1410   : > { %v2893_v41 = vrot.slane %v2892_v38, 1  ;;  %v2887_v43 = vadd.f32 %v2886_v40, %v2885_v37 }
0x1412   : > { %v2894_v44 = vadd.f32 %v2893_v41, %v2892_v38  ;;  %v2896_v45 = vmul.f32 0.125, %v2887_v43 }
0x1414   : > { %v2897_v46 = vmul.f32 0.125, %v2894_v44 }
0x1416   : > { %v2912_v47 = vsel %vm2911_vm6, %v2897_v46, %v2896_v45 }
0x1417   : > { %3723 = vmatmul.mubr.msk.f32.vlgmr.msra.gmra.mrb[0].mxu0 %vm792_vm2, %v2912_v47 }
0x14ea   : > { %v2981_v49 = vpop.f32.mrb[0].mxu0 }
0x14eb   : > { %v2982_v3 = vadd.f32 %v3353_v48, %v2981_v49  ;;  %v3724_v51 = vpop.f32.mrb[1].mxu0 }
0x14ed   : > { %v2986_v52 = vsel %vm2985_vm7, %v2982_v3, -inf }
0x14ee   : > { %2987 = vmax.xlane.f32.xlu0 %v2986_v52 }
0x157b   : > { %v2988_v54 = vpop.xlane.xlu0 %2987 }
0x157c   : > { %v2989_v55 = vsub.f32 %v2982_v3, %v2988_v54 }
0x157e   : > { %v2990_v56 = vmul.f32 1.442695, %v2989_v55 }
0x1580   : > { %3878 = vpow2.f32 %v2990_v56 }
0x158a   : > { %v3879_v8 = vpop.eup %3878 }
0x158b   : > { %v2992_v57 = vsel %vm2985_vm7, %v3879_v8, 0.0 }
0x158c   : > { %2993 = vadd.xlane.f32.xlu0 %v2992_v57 }
0x1619   : > { %v2994_v58 = vpop.xlane.xlu0 %2993 }
0x161a   : > { %3880 = vlog2.f32 %v2994_v58 }
0x1624   : > { %v3881_v59 = vpop.eup %3880 }
0x1625   : > { %v2996_v60 = vmul.f32 0.6931472, %v3881_v59 }
0x1627   : > { %v2997_v61 = vadd.f32 %v2996_v60, %v2988_v54 }
0x1629   : > { %v2998_v39 = vsub.f32 %v2982_v3, %v2997_v61 }
0x162b   : > { %2999 = vst.msk [vmem:[#allocation9] sm:$0x3] %vm2985_vm7, %v2998_v39 }
0x162c PF: > { %p3752_p9 = scmp.eq.s32.totalorder %s4157_s25, 1  ;;  %s4052_s15 = smov [#allocation9]  }
0x162d   : > { %s3007_s14 = sshll.u32 %s4052_s15, 4  ;;  %s3008_s14 = int_to_ptr.vmem [resolvable:$true] %s3007_s14 }
0x162e   : > { %s3972_s10 = scalar_lea.vmem %s3008_s14, 32  ;;  %p3979_p6 = scmp.lt.s32.totalorder %s3008_s14, %s3008_s14 }
0x162f   : > { %p3973_p0 = scmp.ne.s32.totalorder %s3008_s14, %s3972_s10  ;;  %p3980_p10 = scmp.lt.s32.totalorder %s3972_s10, %s3972_s10 }
0x1631   : > { %p3974_p3 = pnand %p3973_p0, %p3752_p9  ;;  %p3981_p4 = por %p3980_p10, %p3979_p6 }
0x1633   : > { %p3975_p5 = pneg %p3974_p3 }
0x1635   : > { %p3982_p13 = pnand %p3981_p4, %p3975_p5 }
0x1637   : > { %3985 = shalt.err (!%p3982_p13)
}
0x1638   : > { %s4840_s19 = sld [smem:[#allocation30_spill]] }
0x163e   : > { %s3986_s21 = scalar_lea.hbm %s4840_s19, 32 }
0x163f   : > { %p3987_p1 = scmp.ne.s32.totalorder %s4840_s19, %s3986_s21  ;;  %p3992_p8 = scmp.lt.u32.totalorder %s3986_s21, %s4840_s19 }
0x1641   : > { %p3988_p12 = pnand %p3987_p1, %p3752_p9 }
0x1643   : > { %p3989_p11 = pneg %p3988_p12 }
0x1645   : > { %p3994_p2 = pnand %p3992_p8, %p3989_p11 }
0x1647   : > { %3997 = shalt.err (!%p3994_p2)
}
0x1648   : > { %3738 = dma.vmem_to_hbm [thread:$0]  (%p3752_p9), %s3008_s14, 32, %s4840_s19, [#allocation5]  }
0x1649   : > { %4023 = dma.done.wait (%p3752_p9), [#allocation5], 32  }
0x164a   : > { %4025 = vsyncadd (%p3752_p9), [#allocation5], 4294967264 }
0x164b PF: > { %s4841_s24 = sld [smem:[#allocation15_spill]]  ;;  %s4842_s21 = sld [smem:[#allocation13_spill]] }
0x164c   : > { %s4843_s22 = sld [smem:[#allocation14_spill]]  ;;  %s4844_s23 = sld [smem:[#allocation16_spill]] }
0x1651   : > { %p30_p7 = scmp.ge.s32.totalorder %s4841_s24, 4  }
0x1653   :  { %32 = sbr.rel (!%p30_p7) target bundleno = 21 (0x15), region = 195 }
0x165a   :  { %3020 = vsyncpa [#allocation4], 1 }
0x165b   :  { %3022 = vsyncpa [#allocation4 + $0x1], 1 }
0x165c   :  { %3023 = vsyncpa [#allocation7], 1 }
0x165d   :  { %3025 = vsyncpa [#allocation7 + $0x1], 1 }
0x165e   :  { %3026 = vsyncpa [#allocation5], 1 }
0x165f   :  { %3028 = vsyncpa [#allocation5 + $0x1], 1 }

</bundles_post_ra>
